<compile_context>
chip_gen: v6e
topology: v6e:2x2x1
jax: 0.10.0
libtpu: 0.0.40
codegen_flags: <defaults>
</compile_context>

<pallas_src>
import functools

import jax
import jax.numpy as jnp
from jax.experimental import pallas as pl
from jax.experimental.pallas import tpu as pltpu


def _layer_norm(y, gamma, beta, eps=1e-5):
    mean = jnp.mean(y, axis=-1, keepdims=True)
    var = jnp.mean((y - mean) ** 2, axis=-1, keepdims=True)  # biased, as in nn.LayerNorm
    return (y - mean) * jax.lax.rsqrt(var + eps) * gamma + beta


def encoder_layer_kernel(
    # inputs
    x_tile_ref, x_full_ref, mask_ref,
    wq_ref, bq_ref, wkv_ref, bkv_ref, wo_ref, bo_ref,
    g1_ref, be1_ref,
    w1_ref, b1_ref, w2_ref, b2_ref,
    g2_ref, be2_ref,
    # outputs
    out_ref, attn_ref,
    # scratch
    k_scr, v_scr,
    *, num_heads,
):
    qi = pl.program_id(1)
    _, tq, D = x_tile_ref.shape
    S = x_full_ref.shape[1]
    H = num_heads
    dh = D // H

    # ---- K/V projection: once per batch element, kept resident (head-major bf16) ----
    @pl.when(qi == 0)
    def _():
        x_full = x_full_ref[0].astype(jnp.bfloat16)                       # (S, D)
        kv = jnp.dot(x_full, wkv_ref[...],
                     preferred_element_type=jnp.float32) + bkv_ref[...]   # (S, 2D) f32
        k = kv[:, :D].reshape(S, H, dh)
        v = kv[:, D:].reshape(S, H, dh)
        k_scr[...] = jnp.transpose(k, (1, 0, 2)).astype(k_scr.dtype)      # (H, S, dh)
        v_scr[...] = jnp.transpose(v, (1, 0, 2)).astype(v_scr.dtype)

    # ---- additive key-padding bias, hoisted out of the per-head math ----
    mask = mask_ref[0].astype(jnp.float32)            # (1, S); 1 = keep, 0 = masked
    bias = (mask - 1.0) * 1e9                         # 0 for keep, -1e9 for masked

    x_res = x_tile_ref[0].astype(jnp.float32)         # (tq, D) residual path in f32
    x_bf = x_res.astype(jnp.bfloat16)

    # ---- Q projection (1/sqrt(dh) already folded into wq/bq by the wrapper) ----
    q = jnp.dot(x_bf, wq_ref[...], preferred_element_type=jnp.float32) + bq_ref[...]
    q_h = jnp.transpose(q.reshape(tq, H, dh), (1, 0, 2)).astype(jnp.bfloat16)  # (H, tq, dh)

    k_h = k_scr[...]                                   # (H, S, dh) bf16
    v_h = v_scr[...]

    # ---- head-batched scaled dot-product attention ----
    scores = jnp.einsum("hqd,hkd->hqk", q_h, k_h,
                        preferred_element_type=jnp.float32)                # (H, tq, S)
    scores = scores + bias[None, :, :]
    scores = scores - jnp.max(scores, axis=-1, keepdims=True)
    e = jnp.exp(scores)
    attn = e * pl.reciprocal(jnp.sum(e, axis=-1, keepdims=True), approx=True)
    attn_ref[0] = attn.astype(attn_ref.dtype)

    ctx_h = jnp.einsum("hqk,hkd->hqd", attn.astype(jnp.bfloat16), v_h,
                       preferred_element_type=jnp.float32)                 # (H, tq, dh)
    ctx = jnp.transpose(ctx_h, (1, 0, 2)).reshape(tq, D).astype(jnp.bfloat16)
    mha = jnp.dot(ctx, wo_ref[...], preferred_element_type=jnp.float32) + bo_ref[...]

    # ---- residual + layernorm 1 (dropout disabled / eval) ----
    norm1 = _layer_norm(mha + x_res, g1_ref[...], be1_ref[...])

    # ---- position-wise FFN (tiled over the sequence) ----
    hid = jnp.dot(norm1.astype(jnp.bfloat16), w1_ref[...],
                  preferred_element_type=jnp.float32) + b1_ref[...]
    hid = jnp.maximum(hid, 0.0)                                            # ReLU
    ffo = jnp.dot(hid.astype(jnp.bfloat16), w2_ref[...],
                  preferred_element_type=jnp.float32) + b2_ref[...]

    # ---- residual + layernorm 2 ----
    norm2 = _layer_norm(ffo + norm1, g2_ref[...], be2_ref[...])
    out_ref[0] = norm2.astype(out_ref.dtype)


def _pick_q_tile(S, target=128):
    """Largest power-of-two tile <= target that divides S (falls back to S)."""
    if S <= target:
        return S
    t = target
    while t >= 8:
        if S % t == 0:
            return t
        t //= 2
    return S


def _vmem_limit_bytes(S, D, d_ff, H, tq, attn_bytes):
    """Estimate VMEM needed by the chosen tiling (double-buffered blocks + scratch)."""
    f32, bf16 = 4, 2
    dbl = 2
    blocks = 0
    blocks += dbl * tq * D * f32                                   # x query tile
    blocks += dbl * S * D * f32                                    # x full (K/V source)
    blocks += dbl * S * f32                                        # mask
    blocks += dbl * (4 * D * D + 2 * D * d_ff) * bf16              # weights (bf16)
    blocks += dbl * (8 * D + d_ff) * f32                           # biases / LN params
    blocks += dbl * tq * D * f32                                   # out tile
    blocks += dbl * H * tq * S * attn_bytes                        # attn tile (dominant)
    scratch = 2 * H * S * (D // H) * bf16                          # K/V head-major scratch
    temps = 3 * H * tq * S * f32 + 2 * S * D * f32 + tq * d_ff * f32
    est = int((blocks + scratch + temps) * 1.25)
    return int(min(112 * 2**20, max(est, 16 * 2**20)))


def encoder_layer(x, mask, params, num_heads, attn_dtype=jnp.float32):
    B, S, D = x.shape
    d_ff = params["w1"].shape[1]
    H = num_heads
    dh = D // H
    tq = _pick_q_tile(S)
    nq = S // tq

    cdt = jnp.bfloat16
    scale = 1.0 / float(dh) ** 0.5
    # Fold the 1/sqrt(dh) softmax scale into the Q projection; fuse K|V weights.
    wq = (params["wq"] * scale).astype(cdt)
    bq = (params["bq"] * scale).astype(jnp.float32)
    wkv = jnp.concatenate([params["wk"], params["wv"]], axis=1).astype(cdt)
    bkv = jnp.concatenate([params["bk"], params["bv"]], axis=1).astype(jnp.float32)
    wo = params["wo"].astype(cdt)
    bo = params["bo"].astype(jnp.float32)
    w1 = params["w1"].astype(cdt)
    b1 = params["b1"].astype(jnp.float32)
    w2 = params["w2"].astype(cdt)
    b2 = params["b2"].astype(jnp.float32)
    g1 = params["g1"].astype(jnp.float32)
    be1 = params["be1"].astype(jnp.float32)
    g2 = params["g2"].astype(jnp.float32)
    be2 = params["be2"].astype(jnp.float32)

    def rep(shape):
        # full-array (untiled) weight block, replicated across the grid
        return pl.BlockSpec(shape, lambda b, qi: tuple(0 for _ in shape))

    in_specs = [
        pl.BlockSpec((1, tq, D), lambda b, qi: (b, qi, 0)),   # x (query tile)
        pl.BlockSpec((1, S, D), lambda b, qi: (b, 0, 0)),     # x (full seq, for K/V)
        pl.BlockSpec((1, 1, S), lambda b, qi: (b, 0, 0)),     # mask
        rep((D, D)), rep((1, D)),                             # wq, bq (pre-scaled)
        rep((D, 2 * D)), rep((1, 2 * D)),                     # wkv, bkv (fused)
        rep((D, D)), rep((1, D)),                             # wo, bo
        rep((1, D)), rep((1, D)),                             # gamma1, beta1
        rep((D, d_ff)), rep((1, d_ff)),                       # w1, b1
        rep((d_ff, D)), rep((1, D)),                          # w2, b2
        rep((1, D)), rep((1, D)),                             # gamma2, beta2
    ]
    out_specs = [
        pl.BlockSpec((1, tq, D), lambda b, qi: (b, qi, 0)),
        pl.BlockSpec((1, H, tq, S), lambda b, qi: (b, 0, qi, 0)),
    ]
    out_shape = (
        jax.ShapeDtypeStruct((B, S, D), jnp.float32),
        jax.ShapeDtypeStruct((B, H, S, S), attn_dtype),
    )
    scratch_shapes = [
        pltpu.VMEM((H, S, dh), cdt),   # K (head-major, resident per batch element)
        pltpu.VMEM((H, S, dh), cdt),   # V
    ]

    vmem_limit = _vmem_limit_bytes(S, D, d_ff, H, tq, jnp.dtype(attn_dtype).itemsize)
    kernel = functools.partial(encoder_layer_kernel, num_heads=H)
    return pl.pallas_call(
        kernel,
        out_shape=out_shape,
        grid_spec=pltpu.PrefetchScalarGridSpec(
            num_scalar_prefetch=0,
            grid=(B, nq),
            in_specs=in_specs,
            out_specs=out_specs,
            scratch_shapes=scratch_shapes,
        ),
        compiler_params=pltpu.CompilerParams(
            dimension_semantics=("parallel", "arbitrary"),
            vmem_limit_bytes=vmem_limit,
        ),
    )(x, x, mask, wq, bq, wkv, bkv, wo, bo, g1, be1, w1, b1, w2, b2, g2, be2)


def encoder_layer_ref(x, mask, params, num_heads):
    """Pure-JAX f32 reference (same math as the PyTorch module, eval mode)."""
    B, S, D = x.shape
    dh = D // num_heads
    q = x @ params["wq"] + params["bq"]
    k = x @ params["wk"] + params["bk"]
    v = x @ params["wv"] + params["bv"]

    def split(t):  # (B,S,D) -> (B,H,S,dh)
        return t.reshape(B, S, num_heads, dh).transpose(0, 2, 1, 3)

    qh, kh, vh = split(q), split(k), split(v)
    scores = jnp.einsum("bhqd,bhkd->bhqk", qh, kh) / jnp.sqrt(jnp.float32(dh))
    m = mask[:, None, :, :]                          # (B,1,1,S)
    scores = jnp.where(m == 0, -1e9, scores)
    attn = jax.nn.softmax(scores, axis=-1)
    ctx = jnp.einsum("bhqk,bhkd->bhqd", attn, vh).transpose(0, 2, 1, 3).reshape(B, S, D)
    mha = ctx @ params["wo"] + params["bo"]

    def ln(y, g, b, eps=1e-5):
        mu = jnp.mean(y, -1, keepdims=True)
        var = jnp.mean((y - mu) ** 2, -1, keepdims=True)
        return (y - mu) * jax.lax.rsqrt(var + eps) * g + b

    norm1 = ln(mha + x, params["g1"], params["be1"])
    ffo = jnp.maximum(norm1 @ params["w1"] + params["b1"], 0.0) @ params["w2"] + params["b2"]
    norm2 = ln(ffo + norm1, params["g2"], params["be2"])
    return norm2, attn


if __name__ == "__main__":
    B, S, D, H, DFF = 2, 8, 32, 4, 64

    key = jax.random.PRNGKey(0)
    keys = jax.random.split(key, 12)
    scale = 0.1
    params = {
        "wq": scale * jax.random.normal(keys[0], (D, D), jnp.float32),
        "bq": scale * jax.random.normal(keys[1], (1, D), jnp.float32),
        "wk": scale * jax.random.normal(keys[2], (D, D), jnp.float32),
        "bk": scale * jax.random.normal(keys[3], (1, D), jnp.float32),
        "wv": scale * jax.random.normal(keys[4], (D, D), jnp.float32),
        "bv": scale * jax.random.normal(keys[5], (1, D), jnp.float32),
        "wo": scale * jax.random.normal(keys[6], (D, D), jnp.float32),
        "bo": scale * jax.random.normal(keys[7], (1, D), jnp.float32),
        "g1": jnp.ones((1, D), jnp.float32),
        "be1": jnp.zeros((1, D), jnp.float32),
        "w1": scale * jax.random.normal(keys[8], (D, DFF), jnp.float32),
        "b1": scale * jax.random.normal(keys[9], (1, DFF), jnp.float32),
        "w2": scale * jax.random.normal(keys[10], (DFF, D), jnp.float32),
        "b2": scale * jax.random.normal(keys[11], (1, D), jnp.float32),
        "g2": jnp.ones((1, D), jnp.float32),
        "be2": jnp.zeros((1, D), jnp.float32),
    }

    x = jax.random.normal(jax.random.PRNGKey(42), (B, S, D), jnp.float32)
    # key-padding mask: batch 0 fully valid, batch 1 has last 2 positions masked
    mask = jnp.ones((B, 1, S), jnp.int32)
    mask = mask.at[1, 0, S - 2:].set(0)

    out, attn = encoder_layer(x, mask, params, num_heads=H)
    jax.block_until_ready((out, attn))

    out_ref, attn_ref = encoder_layer_ref(x, mask, params, num_heads=H)
    # Tolerances loosened for bf16 matmul operands (f32 accumulation).
    assert jnp.allclose(out, out_ref, atol=2e-2, rtol=2e-2), "output mismatch"
    assert jnp.allclose(attn, attn_ref, atol=1e-2, rtol=1e-2), "attention mismatch"

    print("KERNEL_OK")
</pallas_src>

<mosaic_0001>
module attributes {stable_mosaic.version = 11 : i64} {
  func.func @encoder_layer_kernel(%arg0: i32, %arg1: i32, %arg2: memref<1x8x32xf32, #tpu.memory_space<vmem>>, %arg3: memref<1x8x32xf32, #tpu.memory_space<vmem>>, %arg4: memref<1x1x8xi32, #tpu.memory_space<vmem>>, %arg5: memref<32x32xbf16, #tpu.memory_space<vmem>>, %arg6: memref<1x32xf32, #tpu.memory_space<vmem>>, %arg7: memref<32x64xbf16, #tpu.memory_space<vmem>>, %arg8: memref<1x64xf32, #tpu.memory_space<vmem>>, %arg9: memref<32x32xbf16, #tpu.memory_space<vmem>>, %arg10: memref<1x32xf32, #tpu.memory_space<vmem>>, %arg11: memref<1x32xf32, #tpu.memory_space<vmem>>, %arg12: memref<1x32xf32, #tpu.memory_space<vmem>>, %arg13: memref<32x64xbf16, #tpu.memory_space<vmem>>, %arg14: memref<1x64xf32, #tpu.memory_space<vmem>>, %arg15: memref<64x32xbf16, #tpu.memory_space<vmem>>, %arg16: memref<1x32xf32, #tpu.memory_space<vmem>>, %arg17: memref<1x32xf32, #tpu.memory_space<vmem>>, %arg18: memref<1x32xf32, #tpu.memory_space<vmem>>, %arg19: memref<1x8x32xf32, #tpu.memory_space<vmem>>, %arg20: memref<1x4x8x8xf32, #tpu.memory_space<vmem>>, %arg21: memref<4x8x8xbf16, #tpu.memory_space<vmem>>, %arg22: memref<4x8x8xbf16, #tpu.memory_space<vmem>>) attributes {dimension_semantics = [#tpu.dimension_semantics<parallel>, #tpu.dimension_semantics<arbitrary>], iteration_bounds = array<i64: 2, 1>, scalar_prefetch = 0 : i64, scratch_operands = 2 : i64, tpu.core_type = #tpu.core_type<tc>, window_params = [{transform_indices = @transform_0, window_bounds = array<i64: 1, 8, 32>}, {transform_indices = @transform_1, window_bounds = array<i64: 1, 8, 32>}, {transform_indices = @transform_2, window_bounds = array<i64: 1, 1, 8>}, {pipeline_mode = #tpu.pipeline_mode<synchronous>, transform_indices = @transform_3, window_bounds = array<i64: 32, 32>}, {pipeline_mode = #tpu.pipeline_mode<synchronous>, transform_indices = @transform_4, window_bounds = array<i64: 1, 32>}, {pipeline_mode = #tpu.pipeline_mode<synchronous>, transform_indices = @transform_5, window_bounds = array<i64: 32, 64>}, {pipeline_mode = #tpu.pipeline_mode<synchronous>, transform_indices = @transform_6, window_bounds = array<i64: 1, 64>}, {pipeline_mode = #tpu.pipeline_mode<synchronous>, transform_indices = @transform_7, window_bounds = array<i64: 32, 32>}, {pipeline_mode = #tpu.pipeline_mode<synchronous>, transform_indices = @transform_8, window_bounds = array<i64: 1, 32>}, {pipeline_mode = #tpu.pipeline_mode<synchronous>, transform_indices = @transform_9, window_bounds = array<i64: 1, 32>}, {pipeline_mode = #tpu.pipeline_mode<synchronous>, transform_indices = @transform_10, window_bounds = array<i64: 1, 32>}, {pipeline_mode = #tpu.pipeline_mode<synchronous>, transform_indices = @transform_11, window_bounds = array<i64: 32, 64>}, {pipeline_mode = #tpu.pipeline_mode<synchronous>, transform_indices = @transform_12, window_bounds = array<i64: 1, 64>}, {pipeline_mode = #tpu.pipeline_mode<synchronous>, transform_indices = @transform_13, window_bounds = array<i64: 64, 32>}, {pipeline_mode = #tpu.pipeline_mode<synchronous>, transform_indices = @transform_14, window_bounds = array<i64: 1, 32>}, {pipeline_mode = #tpu.pipeline_mode<synchronous>, transform_indices = @transform_15, window_bounds = array<i64: 1, 32>}, {pipeline_mode = #tpu.pipeline_mode<synchronous>, transform_indices = @transform_16, window_bounds = array<i64: 1, 32>}, {transform_indices = @transform_17, window_bounds = array<i64: 1, 8, 32>}, {transform_indices = @transform_18, window_bounds = array<i64: 1, 4, 8, 8>}]} {
    %c0_i32 = arith.constant 0 : i32
    %0 = arith.cmpi eq, %arg1, %c0_i32 : i32
    %1 = arith.extui %0 : i1 to i32
    %c0_i32_0 = arith.constant 0 : i32
    %2 = arith.cmpi ne, %1, %c0_i32_0 : i32
    scf.if %2 {
      %c0_63 = arith.constant 0 : index
      %c0_64 = arith.constant 0 : index
      %c0_65 = arith.constant 0 : index
      %117 = vector.load %arg3[%c0_63, %c0_64, %c0_65] : memref<1x8x32xf32, #tpu.memory_space<vmem>>, vector<1x8x32xf32>
      %118 = vector.shape_cast %117 : vector<1x8x32xf32> to vector<8x32xf32>
      %119 = arith.truncf %118 : vector<8x32xf32> to vector<8x32xbf16>
      %c0_66 = arith.constant 0 : index
      %c0_67 = arith.constant 0 : index
      %120 = vector.load %arg7[%c0_66, %c0_67] : memref<32x64xbf16, #tpu.memory_space<vmem>>, vector<32x64xbf16>
      %cst_68 = arith.constant dense<0.000000e+00> : vector<8x64xf32>
      %121 = tpu.matmul %119, %120, %cst_68 {dimension_numbers = #tpu.dot_dimension_numbers<[1], [0], [0], [1], [0, 0, 1, 1], [], []>} : vector<8x32xbf16>, vector<32x64xbf16>, vector<8x64xf32> -> vector<8x64xf32>
      %c0_69 = arith.constant 0 : index
      %c0_70 = arith.constant 0 : index
      %122 = vector.load %arg8[%c0_69, %c0_70] : memref<1x64xf32, #tpu.memory_space<vmem>>, vector<1x64xf32>
      %123 = vector.broadcast %122 : vector<1x64xf32> to vector<8x64xf32>
      %124 = arith.addf %121, %123 : vector<8x64xf32>
      %125 = vector.extract_strided_slice %124 {offsets = [0, 0], sizes = [8, 32], strides = [1, 1]} : vector<8x64xf32> to vector<8x32xf32>
      %126 = vector.shape_cast %125 : vector<8x32xf32> to vector<8x4x8xf32>
      %127 = vector.extract_strided_slice %124 {offsets = [0, 32], sizes = [8, 32], strides = [1, 1]} : vector<8x64xf32> to vector<8x32xf32>
      %128 = vector.shape_cast %127 : vector<8x32xf32> to vector<8x4x8xf32>
      %129 = tpu.transpose %126, [1, 0, 2] : vector<8x4x8xf32> -> vector<4x8x8xf32>
      %130 = arith.truncf %129 : vector<4x8x8xf32> to vector<4x8x8xbf16>
      %c0_71 = arith.constant 0 : index
      %c0_72 = arith.constant 0 : index
      %c0_73 = arith.constant 0 : index
      %131 = vector.load %arg21[%c0_71, %c0_72, %c0_73] : memref<4x8x8xbf16, #tpu.memory_space<vmem>>, vector<4x8x8xbf16>
      tpu.vector_store %arg21[%c0_71, %c0_72, %c0_73], %130 {strides = array<i32>} : memref<4x8x8xbf16, #tpu.memory_space<vmem>>, vector<4x8x8xbf16>,
      %132 = tpu.transpose %128, [1, 0, 2] : vector<8x4x8xf32> -> vector<4x8x8xf32>
      %133 = arith.truncf %132 : vector<4x8x8xf32> to vector<4x8x8xbf16>
      %c0_74 = arith.constant 0 : index
      %c0_75 = arith.constant 0 : index
      %c0_76 = arith.constant 0 : index
      %134 = vector.load %arg22[%c0_74, %c0_75, %c0_76] : memref<4x8x8xbf16, #tpu.memory_space<vmem>>, vector<4x8x8xbf16>
      tpu.vector_store %arg22[%c0_74, %c0_75, %c0_76], %133 {strides = array<i32>} : memref<4x8x8xbf16, #tpu.memory_space<vmem>>, vector<4x8x8xbf16>,
    } else {
    }
    %c0 = arith.constant 0 : index
    %c0_1 = arith.constant 0 : index
    %c0_2 = arith.constant 0 : index
    %3 = vector.load %arg4[%c0, %c0_1, %c0_2] : memref<1x1x8xi32, #tpu.memory_space<vmem>>, vector<1x1x8xi32>
    %4 = vector.shape_cast %3 : vector<1x1x8xi32> to vector<1x8xi32>
    %5 = arith.sitofp %4 : vector<1x8xi32> to vector<1x8xf32>
    %cst = arith.constant 1.000000e+00 : f32
    %6 = vector.broadcast %cst : f32 to vector<1x8xf32>
    %7 = arith.subf %5, %6 : vector<1x8xf32>
    %cst_3 = arith.constant 1.000000e+09 : f32
    %8 = vector.broadcast %cst_3 : f32 to vector<1x8xf32>
    %9 = arith.mulf %7, %8 : vector<1x8xf32>
    %c0_4 = arith.constant 0 : index
    %c0_5 = arith.constant 0 : index
    %c0_6 = arith.constant 0 : index
    %10 = vector.load %arg2[%c0_4, %c0_5, %c0_6] : memref<1x8x32xf32, #tpu.memory_space<vmem>>, vector<1x8x32xf32>
    %11 = vector.shape_cast %10 : vector<1x8x32xf32> to vector<8x32xf32>
    %12 = arith.truncf %11 : vector<8x32xf32> to vector<8x32xbf16>
    %c0_7 = arith.constant 0 : index
    %c0_8 = arith.constant 0 : index
    %13 = vector.load %arg5[%c0_7, %c0_8] : memref<32x32xbf16, #tpu.memory_space<vmem>>, vector<32x32xbf16>
    %cst_9 = arith.constant dense<0.000000e+00> : vector<8x32xf32>
    %14 = tpu.matmul %12, %13, %cst_9 {dimension_numbers = #tpu.dot_dimension_numbers<[1], [0], [0], [1], [0, 0, 1, 1], [], []>} : vector<8x32xbf16>, vector<32x32xbf16>, vector<8x32xf32> -> vector<8x32xf32>
    %c0_10 = arith.constant 0 : index
    %c0_11 = arith.constant 0 : index
    %15 = vector.load %arg6[%c0_10, %c0_11] : memref<1x32xf32, #tpu.memory_space<vmem>>, vector<1x32xf32>
    %16 = vector.broadcast %15 : vector<1x32xf32> to vector<8x32xf32>
    %17 = arith.addf %14, %16 : vector<8x32xf32>
    %18 = vector.shape_cast %17 : vector<8x32xf32> to vector<8x4x8xf32>
    %19 = tpu.transpose %18, [1, 0, 2] : vector<8x4x8xf32> -> vector<4x8x8xf32>
    %20 = arith.truncf %19 : vector<4x8x8xf32> to vector<4x8x8xbf16>
    %c0_12 = arith.constant 0 : index
    %c0_13 = arith.constant 0 : index
    %c0_14 = arith.constant 0 : index
    %21 = vector.load %arg21[%c0_12, %c0_13, %c0_14] : memref<4x8x8xbf16, #tpu.memory_space<vmem>>, vector<4x8x8xbf16>
    %c0_15 = arith.constant 0 : index
    %c0_16 = arith.constant 0 : index
    %c0_17 = arith.constant 0 : index
    %22 = vector.load %arg22[%c0_15, %c0_16, %c0_17] : memref<4x8x8xbf16, #tpu.memory_space<vmem>>, vector<4x8x8xbf16>
    "tpu.trace_start"() <{level = 10 : i32, message = "hqd,hkd->hqk"}> : () -> ()
    %cst_18 = arith.constant dense<0.000000e+00> : vector<4x8x8xf32>
    %23 = tpu.matmul %20, %21, %cst_18 {dimension_numbers = #tpu.dot_dimension_numbers<[2], [2], [1], [1], [0, 0, 0, 1, 1, 1], [0], [0]>} : vector<4x8x8xbf16>, vector<4x8x8xbf16>, vector<4x8x8xf32> -> vector<4x8x8xf32>
    "tpu.trace_stop"() : () -> ()
    %24 = vector.shape_cast %9 : vector<1x8xf32> to vector<1x1x8xf32>
    %25 = vector.broadcast %24 : vector<1x1x8xf32> to vector<4x8x8xf32>
    %26 = arith.addf %23, %25 : vector<4x8x8xf32>
    %cst_19 = arith.constant dense<0xFF800000> : vector<4x8xf32>
    %27 = vector.multi_reduction <maximumf>, %26, %cst_19 [2] : vector<4x8x8xf32> to vector<4x8xf32>
    %28 = vector.shape_cast %27 : vector<4x8xf32> to vector<4x8x1xf32>
    %29 = vector.broadcast %28 : vector<4x8x1xf32> to vector<4x8x8xf32>
    %30 = arith.subf %26, %29 : vector<4x8x8xf32>
    %31 = math.exp %30 : vector<4x8x8xf32>
    %cst_20 = arith.constant dense<0.000000e+00> : vector<4x8xf32>
    %32 = vector.multi_reduction <add>, %31, %cst_20 [2] : vector<4x8x8xf32> to vector<4x8xf32>
    %33 = vector.shape_cast %32 : vector<4x8xf32> to vector<4x8x1xf32>
    %34 = tpu.reciprocal %33 {approx = true} : vector<4x8x1xf32> -> vector<4x8x1xf32>
    %35 = vector.broadcast %34 : vector<4x8x1xf32> to vector<4x8x8xf32>
    %36 = arith.mulf %31, %35 : vector<4x8x8xf32>
    %c0_21 = arith.constant 0 : index
    %c0_22 = arith.constant 0 : index
    %c0_23 = arith.constant 0 : index
    %c0_24 = arith.constant 0 : index
    %37 = vector.load %arg20[%c0_21, %c0_22, %c0_23, %c0_24] : memref<1x4x8x8xf32, #tpu.memory_space<vmem>>, vector<1x4x8x8xf32>
    %38 = vector.shape_cast %37 : vector<1x4x8x8xf32> to vector<4x8x8xf32>
    %39 = vector.shape_cast %36 : vector<4x8x8xf32> to vector<1x4x8x8xf32>
    tpu.vector_store %arg20[%c0_21, %c0_22, %c0_23, %c0_24], %39 {strides = array<i32>} : memref<1x4x8x8xf32, #tpu.memory_space<vmem>>, vector<1x4x8x8xf32>,
    %40 = arith.truncf %36 : vector<4x8x8xf32> to vector<4x8x8xbf16>
    "tpu.trace_start"() <{level = 10 : i32, message = "hqk,hkd->hqd"}> : () -> ()
    %cst_25 = arith.constant dense<0.000000e+00> : vector<4x8x8xf32>
    %41 = tpu.matmul %40, %22, %cst_25 {dimension_numbers = #tpu.dot_dimension_numbers<[2], [1], [1], [2], [0, 0, 0, 1, 1, 2], [0], [0]>} : vector<4x8x8xbf16>, vector<4x8x8xbf16>, vector<4x8x8xf32> -> vector<4x8x8xf32>
    "tpu.trace_stop"() : () -> ()
    %42 = tpu.transpose %41, [1, 0, 2] : vector<4x8x8xf32> -> vector<8x4x8xf32>
    %43 = vector.shape_cast %42 : vector<8x4x8xf32> to vector<8x32xf32>
    %44 = arith.truncf %43 : vector<8x32xf32> to vector<8x32xbf16>
    %c0_26 = arith.constant 0 : index
    %c0_27 = arith.constant 0 : index
    %45 = vector.load %arg9[%c0_26, %c0_27] : memref<32x32xbf16, #tpu.memory_space<vmem>>, vector<32x32xbf16>
    %cst_28 = arith.constant dense<0.000000e+00> : vector<8x32xf32>
    %46 = tpu.matmul %44, %45, %cst_28 {dimension_numbers = #tpu.dot_dimension_numbers<[1], [0], [0], [1], [0, 0, 1, 1], [], []>} : vector<8x32xbf16>, vector<32x32xbf16>, vector<8x32xf32> -> vector<8x32xf32>
    %c0_29 = arith.constant 0 : index
    %c0_30 = arith.constant 0 : index
    %47 = vector.load %arg10[%c0_29, %c0_30] : memref<1x32xf32, #tpu.memory_space<vmem>>, vector<1x32xf32>
    %48 = vector.broadcast %47 : vector<1x32xf32> to vector<8x32xf32>
    %49 = arith.addf %46, %48 : vector<8x32xf32>
    %50 = arith.addf %49, %11 : vector<8x32xf32>
    %c0_31 = arith.constant 0 : index
    %c0_32 = arith.constant 0 : index
    %51 = vector.load %arg11[%c0_31, %c0_32] : memref<1x32xf32, #tpu.memory_space<vmem>>, vector<1x32xf32>
    %c0_33 = arith.constant 0 : index
    %c0_34 = arith.constant 0 : index
    %52 = vector.load %arg12[%c0_33, %c0_34] : memref<1x32xf32, #tpu.memory_space<vmem>>, vector<1x32xf32>
    %cst_35 = arith.constant dense<0.000000e+00> : vector<8xf32>
    %53 = vector.multi_reduction <add>, %50, %cst_35 [1] : vector<8x32xf32> to vector<8xf32>
    %54 = vector.shape_cast %53 : vector<8xf32> to vector<8x1xf32>
    %cst_36 = arith.constant 3.200000e+01 : f32
    %55 = vector.broadcast %cst_36 : f32 to vector<8x1xf32>
    %56 = arith.divf %54, %55 : vector<8x1xf32>
    %57 = vector.broadcast %56 : vector<8x1xf32> to vector<8x32xf32>
    %58 = arith.subf %50, %57 : vector<8x32xf32>
    %59 = arith.mulf %58, %58 : vector<8x32xf32>
    %cst_37 = arith.constant dense<0.000000e+00> : vector<8xf32>
    %60 = vector.multi_reduction <add>, %59, %cst_37 [1] : vector<8x32xf32> to vector<8xf32>
    %61 = vector.shape_cast %60 : vector<8xf32> to vector<8x1xf32>
    %cst_38 = arith.constant 3.200000e+01 : f32
    %62 = vector.broadcast %cst_38 : f32 to vector<8x1xf32>
    %63 = arith.divf %61, %62 : vector<8x1xf32>
    %64 = vector.broadcast %56 : vector<8x1xf32> to vector<8x32xf32>
    %65 = arith.subf %50, %64 : vector<8x32xf32>
    %cst_39 = arith.constant 9.99999974E-6 : f32
    %66 = vector.broadcast %cst_39 : f32 to vector<8x1xf32>
    %67 = arith.addf %63, %66 : vector<8x1xf32>
    %68 = math.rsqrt %67 : vector<8x1xf32>
    %69 = vector.broadcast %68 : vector<8x1xf32> to vector<8x32xf32>
    %70 = arith.mulf %65, %69 : vector<8x32xf32>
    %71 = vector.broadcast %51 : vector<1x32xf32> to vector<8x32xf32>
    %72 = arith.mulf %70, %71 : vector<8x32xf32>
    %73 = vector.broadcast %52 : vector<1x32xf32> to vector<8x32xf32>
    %74 = arith.addf %72, %73 : vector<8x32xf32>
    %75 = arith.truncf %74 : vector<8x32xf32> to vector<8x32xbf16>
    %c0_40 = arith.constant 0 : index
    %c0_41 = arith.constant 0 : index
    %76 = vector.load %arg13[%c0_40, %c0_41] : memref<32x64xbf16, #tpu.memory_space<vmem>>, vector<32x64xbf16>
    %cst_42 = arith.constant dense<0.000000e+00> : vector<8x64xf32>
    %77 = tpu.matmul %75, %76, %cst_42 {dimension_numbers = #tpu.dot_dimension_numbers<[1], [0], [0], [1], [0, 0, 1, 1], [], []>} : vector<8x32xbf16>, vector<32x64xbf16>, vector<8x64xf32> -> vector<8x64xf32>
    %c0_43 = arith.constant 0 : index
    %c0_44 = arith.constant 0 : index
    %78 = vector.load %arg14[%c0_43, %c0_44] : memref<1x64xf32, #tpu.memory_space<vmem>>, vector<1x64xf32>
    %79 = vector.broadcast %78 : vector<1x64xf32> to vector<8x64xf32>
    %80 = arith.addf %77, %79 : vector<8x64xf32>
    %cst_45 = arith.constant 0.000000e+00 : f32
    %81 = vector.broadcast %cst_45 : f32 to vector<8x64xf32>
    %82 = arith.maximumf %80, %81 : vector<8x64xf32>
    %83 = arith.truncf %82 : vector<8x64xf32> to vector<8x64xbf16>
    %c0_46 = arith.constant 0 : index
    %c0_47 = arith.constant 0 : index
    %84 = vector.load %arg15[%c0_46, %c0_47] : memref<64x32xbf16, #tpu.memory_space<vmem>>, vector<64x32xbf16>
    %cst_48 = arith.constant dense<0.000000e+00> : vector<8x32xf32>
    %85 = tpu.matmul %83, %84, %cst_48 {dimension_numbers = #tpu.dot_dimension_numbers<[1], [0], [0], [1], [0, 0, 1, 1], [], []>} : vector<8x64xbf16>, vector<64x32xbf16>, vector<8x32xf32> -> vector<8x32xf32>
    %c0_49 = arith.constant 0 : index
    %c0_50 = arith.constant 0 : index
    %86 = vector.load %arg16[%c0_49, %c0_50] : memref<1x32xf32, #tpu.memory_space<vmem>>, vector<1x32xf32>
    %87 = vector.broadcast %86 : vector<1x32xf32> to vector<8x32xf32>
    %88 = arith.addf %85, %87 : vector<8x32xf32>
    %89 = arith.addf %88, %74 : vector<8x32xf32>
    %c0_51 = arith.constant 0 : index
    %c0_52 = arith.constant 0 : index
    %90 = vector.load %arg17[%c0_51, %c0_52] : memref<1x32xf32, #tpu.memory_space<vmem>>, vector<1x32xf32>
    %c0_53 = arith.constant 0 : index
    %c0_54 = arith.constant 0 : index
    %91 = vector.load %arg18[%c0_53, %c0_54] : memref<1x32xf32, #tpu.memory_space<vmem>>, vector<1x32xf32>
    %cst_55 = arith.constant dense<0.000000e+00> : vector<8xf32>
    %92 = vector.multi_reduction <add>, %89, %cst_55 [1] : vector<8x32xf32> to vector<8xf32>
    %93 = vector.shape_cast %92 : vector<8xf32> to vector<8x1xf32>
    %cst_56 = arith.constant 3.200000e+01 : f32
    %94 = vector.broadcast %cst_56 : f32 to vector<8x1xf32>
    %95 = arith.divf %93, %94 : vector<8x1xf32>
    %96 = vector.broadcast %95 : vector<8x1xf32> to vector<8x32xf32>
    %97 = arith.subf %89, %96 : vector<8x32xf32>
    %98 = arith.mulf %97, %97 : vector<8x32xf32>
    %cst_57 = arith.constant dense<0.000000e+00> : vector<8xf32>
    %99 = vector.multi_reduction <add>, %98, %cst_57 [1] : vector<8x32xf32> to vector<8xf32>
    %100 = vector.shape_cast %99 : vector<8xf32> to vector<8x1xf32>
    %cst_58 = arith.constant 3.200000e+01 : f32
    %101 = vector.broadcast %cst_58 : f32 to vector<8x1xf32>
    %102 = arith.divf %100, %101 : vector<8x1xf32>
    %103 = vector.broadcast %95 : vector<8x1xf32> to vector<8x32xf32>
    %104 = arith.subf %89, %103 : vector<8x32xf32>
    %cst_59 = arith.constant 9.99999974E-6 : f32
    %105 = vector.broadcast %cst_59 : f32 to vector<8x1xf32>
    %106 = arith.addf %102, %105 : vector<8x1xf32>
    %107 = math.rsqrt %106 : vector<8x1xf32>
    %108 = vector.broadcast %107 : vector<8x1xf32> to vector<8x32xf32>
    %109 = arith.mulf %104, %108 : vector<8x32xf32>
    %110 = vector.broadcast %90 : vector<1x32xf32> to vector<8x32xf32>
    %111 = arith.mulf %109, %110 : vector<8x32xf32>
    %112 = vector.broadcast %91 : vector<1x32xf32> to vector<8x32xf32>
    %113 = arith.addf %111, %112 : vector<8x32xf32>
    %c0_60 = arith.constant 0 : index
    %c0_61 = arith.constant 0 : index
    %c0_62 = arith.constant 0 : index
    %114 = vector.load %arg19[%c0_60, %c0_61, %c0_62] : memref<1x8x32xf32, #tpu.memory_space<vmem>>, vector<1x8x32xf32>
    %115 = vector.shape_cast %114 : vector<1x8x32xf32> to vector<8x32xf32>
    %116 = vector.shape_cast %113 : vector<8x32xf32> to vector<1x8x32xf32>
    tpu.vector_store %arg19[%c0_60, %c0_61, %c0_62], %116 {strides = array<i32>} : memref<1x8x32xf32, #tpu.memory_space<vmem>>, vector<1x8x32xf32>,
    return
  }
  func.func @transform_0(%arg0: i32, %arg1: i32) -> (i32, i32, i32) {
    %c0_i32 = arith.constant 0 : i32
    %c0_i32_0 = arith.constant 0 : i32
    return %arg0, %arg1, %c0_i32 : i32, i32, i32
  }
  func.func @transform_1(%arg0: i32, %arg1: i32) -> (i32, i32, i32) {
    %c0_i32 = arith.constant 0 : i32
    %c0_i32_0 = arith.constant 0 : i32
    %c0_i32_1 = arith.constant 0 : i32
    return %arg0, %c0_i32, %c0_i32_0 : i32, i32, i32
  }
  func.func @transform_2(%arg0: i32, %arg1: i32) -> (i32, i32, i32) {
    %c0_i32 = arith.constant 0 : i32
    %c0_i32_0 = arith.constant 0 : i32
    %c0_i32_1 = arith.constant 0 : i32
    return %arg0, %c0_i32, %c0_i32_0 : i32, i32, i32
  }
  func.func @transform_3(%arg0: i32, %arg1: i32) -> (i32, i32) {
    %c0_i32 = arith.constant 0 : i32
    %c0_i32_0 = arith.constant 0 : i32
    %c0_i32_1 = arith.constant 0 : i32
    return %c0_i32, %c0_i32_0 : i32, i32
  }
  func.func @transform_4(%arg0: i32, %arg1: i32) -> (i32, i32) {
    %c0_i32 = arith.constant 0 : i32
    %c0_i32_0 = arith.constant 0 : i32
    %c0_i32_1 = arith.constant 0 : i32
    return %c0_i32, %c0_i32_0 : i32, i32
  }
  func.func @transform_5(%arg0: i32, %arg1: i32) -> (i32, i32) {
    %c0_i32 = arith.constant 0 : i32
    %c0_i32_0 = arith.constant 0 : i32
    %c0_i32_1 = arith.constant 0 : i32
    return %c0_i32, %c0_i32_0 : i32, i32
  }
  func.func @transform_6(%arg0: i32, %arg1: i32) -> (i32, i32) {
    %c0_i32 = arith.constant 0 : i32
    %c0_i32_0 = arith.constant 0 : i32
    %c0_i32_1 = arith.constant 0 : i32
    return %c0_i32, %c0_i32_0 : i32, i32
  }
  func.func @transform_7(%arg0: i32, %arg1: i32) -> (i32, i32) {
    %c0_i32 = arith.constant 0 : i32
    %c0_i32_0 = arith.constant 0 : i32
    %c0_i32_1 = arith.constant 0 : i32
    return %c0_i32, %c0_i32_0 : i32, i32
  }
  func.func @transform_8(%arg0: i32, %arg1: i32) -> (i32, i32) {
    %c0_i32 = arith.constant 0 : i32
    %c0_i32_0 = arith.constant 0 : i32
    %c0_i32_1 = arith.constant 0 : i32
    return %c0_i32, %c0_i32_0 : i32, i32
  }
  func.func @transform_9(%arg0: i32, %arg1: i32) -> (i32, i32) {
    %c0_i32 = arith.constant 0 : i32
    %c0_i32_0 = arith.constant 0 : i32
    %c0_i32_1 = arith.constant 0 : i32
    return %c0_i32, %c0_i32_0 : i32, i32
  }
  func.func @transform_10(%arg0: i32, %arg1: i32) -> (i32, i32) {
    %c0_i32 = arith.constant 0 : i32
    %c0_i32_0 = arith.constant 0 : i32
    %c0_i32_1 = arith.constant 0 : i32
    return %c0_i32, %c0_i32_0 : i32, i32
  }
  func.func @transform_11(%arg0: i32, %arg1: i32) -> (i32, i32) {
    %c0_i32 = arith.constant 0 : i32
    %c0_i32_0 = arith.constant 0 : i32
    %c0_i32_1 = arith.constant 0 : i32
    return %c0_i32, %c0_i32_0 : i32, i32
  }
  func.func @transform_12(%arg0: i32, %arg1: i32) -> (i32, i32) {
    %c0_i32 = arith.constant 0 : i32
    %c0_i32_0 = arith.constant 0 : i32
    %c0_i32_1 = arith.constant 0 : i32
    return %c0_i32, %c0_i32_0 : i32, i32
  }
  func.func @transform_13(%arg0: i32, %arg1: i32) -> (i32, i32) {
    %c0_i32 = arith.constant 0 : i32
    %c0_i32_0 = arith.constant 0 : i32
    %c0_i32_1 = arith.constant 0 : i32
    return %c0_i32, %c0_i32_0 : i32, i32
  }
  func.func @transform_14(%arg0: i32, %arg1: i32) -> (i32, i32) {
    %c0_i32 = arith.constant 0 : i32
    %c0_i32_0 = arith.constant 0 : i32
    %c0_i32_1 = arith.constant 0 : i32
    return %c0_i32, %c0_i32_0 : i32, i32
  }
  func.func @transform_15(%arg0: i32, %arg1: i32) -> (i32, i32) {
    %c0_i32 = arith.constant 0 : i32
    %c0_i32_0 = arith.constant 0 : i32
    %c0_i32_1 = arith.constant 0 : i32
    return %c0_i32, %c0_i32_0 : i32, i32
  }
  func.func @transform_16(%arg0: i32, %arg1: i32) -> (i32, i32) {
    %c0_i32 = arith.constant 0 : i32
    %c0_i32_0 = arith.constant 0 : i32
    %c0_i32_1 = arith.constant 0 : i32
    return %c0_i32, %c0_i32_0 : i32, i32
  }
  func.func @transform_17(%arg0: i32, %arg1: i32) -> (i32, i32, i32) {
    %c0_i32 = arith.constant 0 : i32
    %c0_i32_0 = arith.constant 0 : i32
    return %arg0, %arg1, %c0_i32 : i32, i32, i32
  }
  func.func @transform_18(%arg0: i32, %arg1: i32) -> (i32, i32, i32, i32) {
    %c0_i32 = arith.constant 0 : i32
    %c0_i32_0 = arith.constant 0 : i32
    %c0_i32_1 = arith.constant 0 : i32
    return %arg0, %c0_i32, %arg1, %c0_i32_0 : i32, i32, i32, i32
  }
}

</mosaic_0001>

<bundles_post_ra>
// kernel: tpu_custom_call.1
= control target key start
LH: loop header
LB: loop body
LE: loop exit
PB: predicated region body
PF: predicated region fallthrough
CT: control target
= control target key end

     0   :  { %s3768_s0 = inlined_call_operand.vmem [shape: f32[2,8,32], index: 0, kind: input, shape index: {}]   ;;  %s3769_s1 = inlined_call_operand.vmem [shape: f32[2,8,32], index: 1, kind: input, shape index: {}]   ;;  %s3770_s2 = inlined_call_operand.hbm [shape: s32[2,1,8], index: 2, kind: input, shape index: {}]   ;;  %s3771_s3 = inlined_call_operand.vmem [shape: bf16[32,32], index: 3, kind: input, shape index: {}]   ;;  %s3772_s4 = inlined_call_operand.hbm [shape: f32[1,32], index: 4, kind: input, shape index: {}]   ;;  %s3773_s5 = inlined_call_operand.hbm [shape: bf16[32,64], index: 5, kind: input, shape index: {}]   ;;  %s3774_s6 = inlined_call_operand.hbm [shape: f32[1,64], index: 6, kind: input, shape index: {}]   ;;  %s3775_s7 = inlined_call_operand.hbm [shape: bf16[32,32], index: 7, kind: input, shape index: {}]   ;;  %s3776_s8 = inlined_call_operand.hbm [shape: f32[1,32], index: 8, kind: input, shape index: {}]   ;;  %s3777_s9 = inlined_call_operand.hbm [shape: f32[1,32], index: 9, kind: input, shape index: {}]   ;;  %s3778_s10 = inlined_call_operand.vmem [shape: f32[1,32], index: 10, kind: input, shape index: {}]   ;;  %s3779_s11 = inlined_call_operand.vmem [shape: bf16[32,64], index: 11, kind: input, shape index: {}]   ;;  %s3780_s12 = inlined_call_operand.vmem [shape: f32[1,64], index: 12, kind: input, shape index: {}]   ;;  %s3781_s13 = inlined_call_operand.vmem [shape: bf16[64,32], index: 13, kind: input, shape index: {}]   ;;  %s3782_s14 = inlined_call_operand.vmem [shape: f32[1,32], index: 14, kind: input, shape index: {}]   ;;  %s3783_s15 = inlined_call_operand.vmem [shape: f32[1,32], index: 15, kind: input, shape index: {}]   ;;  %s3784_s16 = inlined_call_operand.vmem [shape: f32[1,32], index: 16, kind: input, shape index: {}]   ;;  %s3785_s17 = inlined_call_operand.hbm [shape: f32[2,8,32], index: 17, kind: output, shape index: {0}]   ;;  %s3786_s18 = inlined_call_operand.hbm [shape: f32[2,4,8,8], index: 18, kind: output, shape index: {1}]  }
   0x1   :  { %3795 = sst [smem:[#allocation27_spill]] %s3768_s0 }
   0x2   :  { %3796 = sst [smem:[#allocation28_spill]] %s3769_s1 }
   0x3   :  { %3797 = sst [smem:[#allocation29_spill]] %s3770_s2 }
   0x4   :  { %3798 = sst [smem:[#allocation30_spill]] %s3772_s4 }
   0x5   :  { %3799 = sst [smem:[#allocation31_spill]] %s3773_s5 }
   0x6   :  { %3800 = sst [smem:[#allocation32_spill]] %s3774_s6 }
   0x7   :  { %3801 = sst [smem:[#allocation33_spill]] %s3775_s7 }
   0x8   :  { %3802 = sst [smem:[#allocation34_spill]] %s3776_s8 }
   0x9   :  { %3803 = sst [smem:[#allocation35_spill]] %s3777_s9 }
   0xa   :  { %3804 = sst [smem:[#allocation36_spill]] %s3783_s15 }
   0xb   :  { %3805 = sst [smem:[#allocation37_spill]] %s3784_s16 }
   0xc   :  { %3806 = sst [smem:[#allocation38_spill]] %s3785_s17 }
   0xd   :  { %3807 = sst [smem:[#allocation39_spill]] %s3786_s18 }
   0xe   :  { %24 = vsyncpa [#allocation5], 0 }
   0xf   :  { %26 = vsyncpa [#allocation5 + $0x1], 0 }
  0x10   :  { %27 = vsyncpa [#allocation8], 0 }
  0x11   :  { %28 = vsyncpa [#allocation11], 0 }
  0x12   :  { %29 = vsyncpa [#allocation14], 0 }
  0x13   :  { %30 = vsyncpa [#allocation6], 0 }
  0x14   :  { %32 = vsyncpa [#allocation6 + $0x1], 0 }
  0x15   :  { %33 = vsyncpa [#allocation18], 0 }
  0x16   :  { %35 = vsyncpa [#allocation18 + $0x1], 0  ;;  %s3246_s27 = smov 0   ;;  %s3248_s28 = smov 0  }
  0x17   :  { %s3250_s29 = smov 0   ;;  %s3252_s30 = smov 0  }
  0x18   :  { %s3254_s0 = smov 0   ;;  %s3256_s19 = smov 0  }
  0x19 LB: > { %3808 = sst [smem:[#allocation25_spill]] %s3122_s0  ;;  %s3787_s1 = sadd.s32 4294967295, %s3126_s19   ;;  %s3126_s19 = sphi %s3256_s19, %s41_s19   ;;  %s3122_s0 = sphi %s3254_s0, %s3838_s0   ;;  %s3118_s30 = sphi %s3252_s30, %s3837_s30   ;;  %s3114_s29 = sphi %s3250_s29, %s3841_s29   ;;  %s3110_s28 = sphi %s3248_s28, %s3840_s28   ;;  %s3106_s27 = sphi %s3246_s27, %s3839_s27  }
  0x1a   : > { %p2450_p0 = scmp.ge.s32.totalorder %s3126_s19, 1  ;;  %p3280_p1 = scmp.eq.s32.totalorder %s3787_s1, 0 }
  0x1b   : > { %p488_p2 = scmp.lt.s32.totalorder %s3126_s19, 3  ;;  %s3128_s22 = smov [#allocation7]  }
  0x1c   : > { %s3809_s20 = scalar_select %p3280_p1, 1, 0 }
  0x1d   : > { %p3285_p3 = pnand %p2450_p0, %p488_p2  ;;  %s504_s2 = sshll.u32 %s3128_s22, 4  ;;  %s505_s2 = int_to_ptr.vmem [resolvable:$true] %s504_s2 }
  0x1e   : > { %s3129_s23 = smov [#allocation10]   ;;  %s3130_s26 = smov [#allocation13]  }
  0x1f   : > { %s3810_s21 = scalar_select %p3285_p3, 1, 0 }
  0x20   : > { %p2676_p5 = pneg %p3285_p3  ;;  %s528_s24 = sshll.u32 %s3129_s23, 4  ;;  %s529_s24 = int_to_ptr.vmem [resolvable:$true] %s528_s24 }
  0x21   : > { %s552_s1 = sshll.u32 %s3130_s26, 4  ;;  %s2831_s17 = scalar_lea.vmem %s505_s2, 16  ;;  %s3298_s1 = int_to_ptr.vmem [resolvable:$true] %s552_s1 }
  0x22   : > { %p3294_p6 = pnand %p2676_p5, %p3280_p1  ;;  %p2832_p8 = scmp.ne.s32.totalorder %s505_s2, %s2831_s17 }
  0x23   : > { %s2838_s23 = scalar_lea.vmem %s505_s2, 32  ;;  %p2839_p11 = scmp.lt.s32.totalorder %s505_s2, %s505_s2 }
  0x24   : > { %p3302_p7 = pneg %p3294_p6  ;;  %p2840_p12 = scmp.lt.s32.totalorder %s2838_s23, %s2831_s17 }
  0x26   : > { %p2834_p9 = pnand %p2832_p8, %p3302_p7  ;;  %p2841_p13 = por %p2840_p12, %p2839_p11 }
  0x28   : > { %p2835_p10 = pneg %p2834_p9 }
  0x2a   : > { %p2842_p0 = pnand %p2841_p13, %p2835_p10 }
  0x2c   : > { %2845 = shalt.err (!%p2842_p0)
}
  0x2d   : > { %s3813_s4 = sld [smem:[#allocation30_spill]]  ;;  %s2857_s15 = scalar_lea.vmem %s529_s24, 16 }
  0x2e   : > { %p2858_p2 = scmp.ne.s32.totalorder %s529_s24, %s2857_s15  ;;  %s2864_s18 = scalar_lea.vmem %s529_s24, 32 }
  0x2f   : > { %p2865_p8 = scmp.lt.s32.totalorder %s529_s24, %s529_s24  ;;  %p2866_p9 = scmp.lt.s32.totalorder %s2864_s18, %s2857_s15 }
  0x30   : > { %p2860_p5 = pnand %p2858_p2, %p3302_p7 }
  0x31   : > { %p2867_p3 = por %p2866_p9, %p2865_p8 }
  0x32   : > { %p2861_p4 = pneg %p2860_p5 }
  0x33   : > { %2679 = dma.hbm_to_vmem [thread:$0]  (!%p3294_p6), %s3813_s4, 16, %s505_s2, [#allocation8]  }
  0x34   : > { %p2868_p1 = pnand %p2867_p3, %p2861_p4 }
  0x36   : > { %2871 = shalt.err (!%p2868_p1)
}
  0x37   : > { %s3814_s6 = sld [smem:[#allocation32_spill]]  ;;  %s2883_s16 = scalar_lea.vmem %s3298_s1, 16 }
  0x38   : > { %p2884_p10 = scmp.ne.s32.totalorder %s3298_s1, %s2883_s16  ;;  %s2890_s15 = scalar_lea.vmem %s3298_s1, 32 }
  0x39   : > { %p2891_p3 = scmp.lt.s32.totalorder %s3298_s1, %s3298_s1  ;;  %p2892_p1 = scmp.lt.s32.totalorder %s2890_s15, %s2883_s16 }
  0x3a   : > { %p2886_p11 = pnand %p2884_p10, %p3302_p7 }
  0x3b   : > { %p2893_p4 = por %p2892_p1, %p2891_p3 }
  0x3c   : > { %p2887_p12 = pneg %p2886_p11 }
  0x3d   : > { %2685 = dma.hbm_to_vmem [thread:$0]  (!%p3294_p6), %s3814_s6, 16, %s529_s24, [#allocation11]  }
  0x3e   : > { %p2894_p13 = pnand %p2893_p4, %p2887_p12 }
  0x40   : > { %2897 = shalt.err (!%p2894_p13)
}
  0x41   : > { %s3815_s8 = sld [smem:[#allocation34_spill]]  ;;  %s3131_s24 = smov [#allocation9]  }
  0x42   : > { %s514_s26 = sshll.u32 %s3131_s24, 4  ;;  %s515_s26 = int_to_ptr.vmem [resolvable:$true] %s514_s26 }
  0x43   : > { %s2909_s17 = scalar_lea.vmem %s515_s26, 256  ;;  %p2917_p8 = scmp.lt.s32.totalorder %s515_s26, %s515_s26 }
  0x44   : > { %p2910_p0 = scmp.ne.s32.totalorder %s515_s26, %s2909_s17  ;;  %p2918_p9 = scmp.lt.s32.totalorder %s2909_s17, %s2909_s17 }
  0x46   : > { %p2912_p2 = pnand %p2910_p0, %p3302_p7  ;;  %p2919_p10 = por %p2918_p9, %p2917_p8 }
  0x47   : > { %2691 = dma.hbm_to_vmem [thread:$0]  (!%p3294_p6), %s3815_s8, 16, %s3298_s1, [#allocation14]  }
  0x48   : > { %p2913_p5 = pneg %p2912_p2 }
  0x4a   : > { %p2920_p11 = pnand %p2919_p10, %p2913_p5 }
  0x4c   : > { %2923 = shalt.err (!%p2920_p11)
}
  0x4d   : > { %s3132_s23 = smov 64   ;;  %s3133_s16 = smov 4  }
  0x4e   : > { %s3816_s5 = sld [smem:[#allocation31_spill]]  ;;  %s3134_s18 = smov [#allocation12]  }
  0x4f   : > { %s538_s2 = sshll.u32 %s3134_s18, 4  ;;  %s3135_s24 = smov [#allocation15]   ;;  %s539_s2 = int_to_ptr.vmem [resolvable:$true] %s538_s2 }
  0x50   : > { %s563_s4 = sshll.u32 %s3135_s24, 4  ;;  %s2935_s6 = scalar_lea.vmem %s539_s2, 256  ;;  %s564_s4 = int_to_ptr.vmem [resolvable:$true] %s563_s4 }
  0x51   : > { %p2936_p12 = scmp.ne.s32.totalorder %s539_s2, %s2935_s6  ;;  %p2943_p4 = scmp.lt.s32.totalorder %s539_s2, %s539_s2 }
  0x52   : > { %p2944_p13 = scmp.lt.s32.totalorder %s2935_s6, %s2935_s6 }
  0x53   : > { %p2938_p3 = pnand %p2936_p12, %p3302_p7 }
  0x54   : > { %2682 = dma.hbm_to_vmem [thread:$0]  (!%p3294_p6), %s3816_s5, 256, %s515_s26, [#allocation8], %s3132_s23, %s3132_s23, %s3133_s16  }
  0x55   : > { %p2939_p1 = pneg %p2938_p3  ;;  %p2945_p0 = por %p2944_p13, %p2943_p4 }
  0x57   : > { %p2946_p2 = pnand %p2945_p0, %p2939_p1 }
  0x59   : > { %2949 = shalt.err (!%p2946_p2)
}
  0x5a   : > { %s3817_s7 = sld [smem:[#allocation33_spill]]  ;;  %s2961_s15 = scalar_lea.vmem %s564_s4, 16 }
  0x5b   : > { %p2962_p5 = scmp.ne.s32.totalorder %s564_s4, %s2961_s15  ;;  %s2968_s1 = scalar_lea.vmem %s564_s4, 32 }
  0x5c   : > { %p2969_p10 = scmp.lt.s32.totalorder %s564_s4, %s564_s4  ;;  %p2970_p11 = scmp.lt.s32.totalorder %s2968_s1, %s2961_s15 }
  0x5d   : > { %p2964_p8 = pnand %p2962_p5, %p3302_p7 }
  0x5e   : > { %p2971_p12 = por %p2970_p11, %p2969_p10 }
  0x5f   : > { %p2965_p9 = pneg %p2964_p8 }
  0x60   : > { %2688 = dma.hbm_to_vmem [thread:$0]  (!%p3294_p6), %s3817_s7, 256, %s539_s2, [#allocation11], %s3132_s23, %s3132_s23, %s3133_s16  }
  0x61   : > { %p2972_p3 = pnand %p2971_p12, %p2965_p9 }
  0x63   : > { %2975 = shalt.err (!%p2972_p3)
}
  0x64   : > { %s3818_s9 = sld [smem:[#allocation35_spill]]  ;;  %s2449_s22 = sadd.s32 4294967294, %s3126_s19  }
  0x65   : > { %s53_s23 = sadd.s32 1, %s3122_s0  ;;  %s114_s25 = sadd.s32 1, %s3114_s29 }
  0x66   : > { %p55_p7 = scmp.ge.s32.totalorder %s53_s23, 2  ;;  %p121_p1 = scmp.ne.s32.totalorder %s3114_s29, %s3110_s28 }
  0x67   : > { %p122_p4 = scmp.eq.s32.totalorder %s3126_s19, 0  ;;  %p127_p0 = scmp.ne.s32.totalorder %s3110_s28, %s3106_s27 }
  0x68   : > { %s3843_s23 = smov (%p55_p7, %s53_s23), 0  ;;  %s3821_s2 = sadd.s32 4294967295, %s3126_s19  }
  0x69   : > { %3819 = sst [smem:[#allocation26_spill]] %s3843_s23  ;;  %p3362_p13 = por %p122_p4, %p121_p1 }
  0x6a   : > { %2694 = dma.hbm_to_vmem [thread:$0]  (!%p3294_p6), %s3818_s9, 16, %s564_s4, [#allocation14]  }
  0x6b   : > { %s111_s4 = ssub.s32 %s3122_s0, %s3843_s23  ;;  %p447_p6 = scmp.eq.s32.totalorder %s3821_s2, 1 }
  0x6c   : > { %p112_p2 = scmp.eq.s32.totalorder %s111_s4, 0  ;;  %p3822_p5 = scmp.ne.s32.totalorder %s3809_s20, 0 }
  0x6d   : > { %p3378_p9 = por %p447_p6, %p121_p1  ;;  %p453_p10 = scmp.eq.s32.totalorder %s2449_s22, 1 }
  0x6e   : > { %p3374_p8 = por %p3822_p5, %p127_p0  ;;  %p2712_p12 = scmp.lt.s32.totalorder %s3126_s19, 2 }
  0x6f   : > { %s3383_s26 = scalar_select %p112_p2, %s3114_s29, %s114_s25  }
  0x70   : > { %p3385_p11 = por %p453_p10, %p127_p0  ;;  %s612_s1 = sand.u32 1, %s3114_s29  }
  0x71   : > { %s2458_s6 = sshll.u32 %s3122_s0, 4  ;;  %s3826_s2 = sld [smem:[#allocation29_spill]] }
  0x72   : > { %s615_s7 = scalar_lea.vmem [#allocation4], %s612_s1  ;;  %p3397_p3 = pnand %p2712_p12, %p3362_p13 }
  0x73   : > { %s622_s8 = sshll.u32 %s615_s7, 4  ;;  %s613_s22 = scalar_lea.sflag [#allocation5], %s612_s1  ;;  %s623_s8 = int_to_ptr.vmem [resolvable:$true] %s622_s8 }
  0x74   : > { %p2978_p7 = pneg %p3397_p3  ;;  %s2989_s25 = scalar_lea.vmem %s623_s8, 16 }
  0x75   : > { %p2990_p1 = scmp.ne.s32.totalorder %s623_s8, %s2989_s25  ;;  %s3136_s23 = smov [#allocation4]  }
  0x76   : > { %s2994_s0 = sshll.u32 %s3136_s23, 4  ;;  %s2995_s0 = int_to_ptr.vmem [resolvable:$false] %s2994_s0 }
  0x77   : > { %s620_s5 = scalar_lea.hbm %s3826_s2, %s2458_s6  ;;  %p2992_p4 = pnand %p2990_p1, %p2978_p7 }
  0x78   : > { %s2996_s6 = scalar_lea.vmem %s2995_s0, 32  ;;  %p2997_p6 = scmp.lt.s32.totalorder %s623_s8, %s2995_s0 }
  0x79   : > { %p2993_p0 = pneg %p2992_p4  ;;  %p2998_p2 = scmp.lt.s32.totalorder %s2996_s6, %s2989_s25 }
  0x7b   : > { %p2999_p5 = por %p2998_p2, %p2997_p6 }
  0x7d   : > { %p3000_p10 = pnand %p2999_p5, %p2993_p0 }
  0x7f   : > { %3003 = shalt.err (!%p3000_p10)
}
  0x80   : > { %2698 = dma.hbm_to_vmem [thread:$0]  (!%p3397_p3), %s620_s5, 16, %s623_s8, %s613_s22  }
  0x81   : > { %p3828_p13 = scmp.ne.s32.totalorder %s3810_s21, 0 }
  0x82   : > { %s3408_s7 = sand.u32 (!%p3828_p13), 1, %s3110_s28  }
  0x83   : > { %631 = sbr.rel (%p3828_p13) target bundleno = 2583 (0xa17), region = 88  ;;  %s634_s23 = scalar_lea.sflag (!%p3828_p13), [#allocation5], %s3408_s7 }
  0x84   : > { %s636_s16 = scalar_lea.vmem (!%p3828_p13), [#allocation4], %s3408_s7 }
  0x88   : > { %3081 = dma.done.wait (%p3374_p8), %s634_s23, 16  }
  0x89   : > { %3083 = vsyncadd (%p3374_p8), %s634_s23, 4294967280  ;;  %p3829_p12 = scmp.ne.s32.totalorder %s3809_s20, 0 }
  0x8b   : > { %3085 = dma.done.wait (%p3829_p12), [#allocation8], 272  }
  0x8c   : > { %3087 = vsyncadd (%p3829_p12), [#allocation8], 4294967024 }
  0x8d   : > { %3089 = dma.done.wait (%p3829_p12), [#allocation11], 272  }
  0x8e   : > { %3091 = vsyncadd (%p3829_p12), [#allocation11], 4294967024 }
  0x8f   : > { %3093 = dma.done.wait (%p3829_p12), [#allocation14], 32  }
  0x90   : > { %3095 = vsyncadd (%p3829_p12), [#allocation14], 4294967264  ;;  %p728_p8 = scmp.lt.s32.totalorder %s3118_s30, 1  ;;  %v3137_v0 = vmov 0.0   ;;  %vm3138_vm0 = vmmov 0   ;;  %s3830_s20 = sld [smem:[#allocation28_spill]]  ;;  %v828_v23 = vlaneseq }
  0x91   : > { %2554 = vmatprep.subr.bf16.mxu1 %v3137_v0  ;;  %2558 = vmatprep.mubr.msk.bf16.mxu1 %vm3138_vm0, %v3137_v0  ;;  %v2788_v1 = vld [vmem:[#allocation9 + $0x8] sm:$0xff]   ;;  %v2789_v2 = vld [vmem:[#allocation9] sm:$0xff]   ;;  %vm769_vm1 = vcmask 261120   ;;  %s3831_s2 = sld [smem:[#allocation27_spill]]  ;;  %v2470_v9 = vld [vmem:[#allocation10] ss:$0 sm:$0xff] }
  0x92   : > { %s729_s5 = scalar_select %p728_p8, %s3118_s30, 1  ;;  %2570 = vmatprep.subr.bf16.mxu0 %v3137_v0  ;;  %2572 = vmatprep.mubr.msk.bf16.mxu0 %vm3138_vm0, %v3137_v0  ;;  %v2790_v4 = vld [vmem:[%s3771_s3 + $0x8] sm:$0xff]   ;;  %v2791_v7 = vld [vmem:[%s3771_s3] sm:$0xff]   ;;  %v3142_v21 = vmov 1983009808   ;;  %v3467_v27 = vshrl.u32 %v828_v23, 7 }
  0x93   : > { %2555 = vmatpush3.bf16.msra.mxu1 %v2788_v1  ;;  %s3139_s23 = smov 104   ;;  %v2479_v15 = vld [vmem:[#allocation7] ss:$0 sm:$0xff]  ;;  %v826_v22 = vunpack.c.l.s4 %v3142_v21  ;;  %v3143_v24 = vmov 1934713408   ;;  %vm1043_vm2 = vcmask 60416  }
  0x94   : > { %s2468_s8 = sshll.u32 %s729_s5, 3  ;;  %2556 = vmatprep.subr.bf16.mxu1 %v3137_v0  ;;  %s3140_s5 = smov 120   ;;  %v858_v25 = vunpack.c.l.s4 %v3143_v24  ;;  %vm1361_vm3 = vcmask 64512   ;;  %vm1601_vm4 = vcmask 1043456   ;;  %vm1932_vm5 = vcmask 130048  }
  0x95   : > { %v827_v26 = vunpack.c.0.s8 %v826_v22  ;;  %s2467_s9 = sshll.u32 %s3408_s7, 5  ;;  %s3147_s24 = smov 24   ;;  %vm1934_vm6 = vcmask 195584   ;;  %vm2142_vm7 = vcmask 523264  }
  0x96   : > { %s738_s21 = scalar_lea.vmem %s3830_s20, %s2468_s8  ;;  %v859_v30 = vunpack.c.0.s8 %v858_v25  ;;  %s3599_s0 = scalar_lea.vmem [#allocation17], %s2467_s9 }
  0x97   : > { %v744_v3 = vld [vmem:[%s738_s21] sm:$0xff]  ;;  %2557 = vmatpush3.bf16.msra.mxu1 %v2789_v2  ;;  %s734_s22 = scalar_lea.vmem %s3831_s2, %s2468_s8  ;;  %s3141_s8 = smov 112   ;;  %v3474_v31 = vsub.s32 %v827_v26, %v3467_v27 }
  0x98   : > { %v745_v5 = vpack.c.bf16 %v744_v3, %v744_v3  ;;  %2562 = vmatprep.subr.bf16.mxu1 %v3137_v0  ;;  %v3448_v6 = vld [vmem:[%s734_s22] sm:$0xff]  ;;  %v3487_v37 = vsub.s32 %v859_v30, %v3467_v27  ;;  %s3145_s20 = smov 16   ;;  %s3146_s21 = smov 8  }
  0x99   : > { %v1129_v8 = vpack.c.bf16 %v3448_v6, %v3448_v6  ;;  %s2520_s22 = sshll.u32 %s3118_s30, 9  ;;  %s2251_s25 = sshll.u32 %s3599_s0, 4  ;;  %s3694_s25 = int_to_ptr.vmem [resolvable:$true] %s2251_s25 }
  0x9a   : > { %2559 = vmatmul.mubr.msk.bf16.vlgmr.msra.gmra.mxu1 %vm769_vm1, %v745_v5  ;;  %s3004_s9 = scalar_lea.vmem %s3694_s25, 512 }
  0x9b   : > { %2563 = vmatpush3.bf16.msra.mxu1 %v2790_v4  ;;  %2566 = vmatprep.mubr.msk.bf16.mxu1 %vm3138_vm0, %v3137_v0  ;;  %p3005_p3 = scmp.ne.s32.totalorder %s3694_s25, %s3004_s9 }
  0x9c   : > { %2564 = vmatprep.subr.bf16.mxu1 %v3137_v0 }
  0x9d   : > { %p3006_p7 = pnand %p3005_p3, %p3378_p9 }
  0x9f   : > { %2565 = vmatpush3.bf16.msra.mxu1 %v2791_v7  ;;  %p3007_p1 = pneg %p3006_p7 }
  0xa0   : > { %2576 = vmatprep.subr.bf16.mxu1 %v3137_v0 }
  0xa2   : > { %2567 = vmatmul.mubr.msk.bf16.vlgmr.msra.gmra.mxu1 %vm769_vm1, %v1129_v8 }
  0xa3   : > { %2578 = vmatprep.mubr.msk.bf16.mxu1 %vm3138_vm0, %v3137_v0 }
 0x15a   : > { %v807_v10 = vpop.f32.mrf.mxu1 }
 0x15b   : > { %v3462_v11 = vadd.f32 %v2470_v9, %v807_v10 }
 0x15c   : > { %v2560_v12 = vpop.f32.mrf.mxu1 }
 0x15d   : > { %820 = vrot.lane.b32.xlu1 %v3462_v11, %s3139_s23  ;;  %814 = vrot.lane.b32.xlu0 %v3462_v11, %s3140_s5 }
 0x15e   : > { %v810_v13 = vpop.f32.mrf.mxu1 }
 0x160   : > { %v2561_v14 = vpop.f32.mrf.mxu1 }
 0x161   : > { %817 = vrot.lane.b32.xlu0 %v3462_v11, %s3141_s8 }
 0x162   : > { %v1191_v16 = vpop.f32.mrf.mxu1 }
 0x163   : > { %v1192_v17 = vadd.f32 %v2479_v15, %v1191_v16 }
 0x164   : > { %v2568_v18 = vpop.f32.mrf.mxu1 }
 0x165   : > { %1201 = vrot.lane.b32.xlu0 %v1192_v17, %s3141_s8  ;;  %1198 = vrot.lane.b32.xlu1 %v1192_v17, %s3140_s5  ;;  %s3832_s5 = sld [smem:[#allocation39_spill]] }
 0x166   : > { %v1194_v19 = vpop.f32.mrf.mxu1 }
 0x168   : > { %v2569_v20 = vpop.f32.mrf.mxu1 }
 0x169   : > { %1204 = vrot.lane.b32.xlu1 %v1192_v17, %s3139_s23 }
 0x16b   : > { %s3692_s8 = scalar_lea.hbm %s3832_s5, %s2520_s22 }
 0x1cf   : > { %v3469_v28 = vpop.permute.xlu1 %820  ;;  %v3471_v29 = vpop.permute.xlu0 %814 }
 0x1d0   : > { %v839_v32 = vcombine.low %v3471_v29, %v3469_v28  ;;  %v840_v33 = vcombine.high %v3471_v29, %v3469_v28 }
 0x1d2   : > { %v847_v38 = vrot.slane %v839_v32, %v3474_v31  ;;  %v854_v39 = vrot.slane %v840_v33, %v3474_v31 }
 0x1d3   : > { %v3480_v34 = vpop.permute.xlu0 %817 }
 0x1d4   : > { %v823_v35 = vcombine.low %v3462_v11, %v3480_v34  ;;  %v824_v36 = vcombine.high %v3462_v11, %v3480_v34 }
 0x1d6   : > { %v831_v40 = vrot.slane %v823_v35, %v3474_v31  ;;  %v838_v41 = vrot.slane %v824_v36, %v3474_v31 }
 0x1d7   : > { %v1199_v42 = vpop.permute.xlu1 %1198  ;;  %v1202_v47 = vpop.permute.xlu0 %1201 }
 0x1d8   : > { %v855_v43 = vcombine.low %v831_v40, %v847_v38  ;;  %v856_v44 = vcombine.high %v831_v40, %v847_v38  ;;  %v871_v45 = vcombine.low %v838_v41, %v854_v39  ;;  %v872_v46 = vcombine.high %v838_v41, %v854_v39 }
 0x1d9   : > { %v1207_v52 = vcombine.low %v1192_v17, %v1202_v47  ;;  %v1208_v53 = vcombine.high %v1192_v17, %v1202_v47 }
 0x1da   : > { %v863_v48 = vrot.slane %v855_v43, %v3487_v37  ;;  %v870_v49 = vrot.slane %v856_v44, %v3487_v37  ;;  %v879_v50 = vrot.slane %v871_v45, %v3487_v37  ;;  %v886_v51 = vrot.slane %v872_v46, %v3487_v37 }
 0x1db   : > { %v1205_v54 = vpop.permute.xlu1 %1204  ;;  %v1215_v2 = vrot.slane %v1207_v52, %v3474_v31  ;;  %v1222_v3 = vrot.slane %v1208_v53, %v3474_v31 }
 0x1dc   : > { %v971_v55 = vcombine.low %v863_v48, %v870_v49  ;;  %v2474_v56 = vcombine.high %v863_v48, %v870_v49  ;;  %v987_v57 = vcombine.low %v879_v50, %v886_v51  ;;  %v2475_v58 = vcombine.high %v879_v50, %v886_v51 }
 0x1dd   : > { %v1223_v59 = vcombine.low %v1199_v42, %v1205_v54  ;;  %v1224_v60 = vcombine.high %v1199_v42, %v1205_v54 }
 0x1de   : > { %v978_v61 = vrot.slane %v971_v55, %v3474_v31  ;;  %v986_v62 = vrot.slane %v2474_v56, %v3474_v31  ;;  %v994_v63 = vrot.slane %v987_v57, %v3474_v31  ;;  %v1002_v1 = vrot.slane %v2475_v58, %v3474_v31 }
 0x1df   : > { %v1231_v4 = vrot.slane %v1223_v59, %v3474_v31  ;;  %v1238_v5 = vrot.slane %v1224_v60, %v3474_v31 }
 0x1e0   : > { %v1003_v7 = vcombine.low %v978_v61, %v986_v62  ;;  %v1004_v8 = vcombine.high %v978_v61, %v986_v62  ;;  %v1019_v9 = vcombine.low %v994_v63, %v1002_v1  ;;  %v1020_v10 = vcombine.high %v994_v63, %v1002_v1 }
 0x1e1   : > { %v1239_v12 = vcombine.low %v1215_v2, %v1231_v4  ;;  %v1240_v13 = vcombine.high %v1215_v2, %v1231_v4  ;;  %v1255_v14 = vcombine.low %v1222_v3, %v1238_v5  ;;  %v1256_v15 = vcombine.high %v1222_v3, %v1238_v5 }
 0x1e2   : > { %v1011_v16 = vrot.slane %v1003_v7, %v3487_v37  ;;  %v1018_v17 = vrot.slane %v1004_v8, %v3487_v37  ;;  %v1027_v18 = vrot.slane %v1019_v9, %v3487_v37  ;;  %v1034_v19 = vrot.slane %v1020_v10, %v3487_v37  ;;  %v1124_v8 = vld [vmem:[%s636_s16] sm:$0x1]  ;;  %s3144_s16 = smov 96  }
 0x1e3   : > { %v1247_v20 = vrot.slane %v1239_v12, %v3487_v37  ;;  %v1254_v21 = vrot.slane %v1240_v13, %v3487_v37  ;;  %v1263_v22 = vrot.slane %v1255_v14, %v3487_v37  ;;  %v1270_v23 = vrot.slane %v1256_v15, %v3487_v37 }
 0x1e4   : > { %v1035_v24 = vcombine.low %v1011_v16, %v1027_v18  ;;  %v1036_v25 = vcombine.high %v1011_v16, %v1027_v18  ;;  %v1037_v26 = vcombine.low %v1018_v17, %v1034_v19  ;;  %v1038_v30 = vcombine.high %v1018_v17, %v1034_v19 }
 0x1e5   : > { %v1275_v32 = vcombine.low %v1247_v20, %v1254_v21  ;;  %v2483_v33 = vcombine.high %v1247_v20, %v1254_v21  ;;  %v1291_v35 = vcombine.low %v1263_v22, %v1270_v23  ;;  %v2484_v36 = vcombine.high %v1263_v22, %v1270_v23 }
 0x1e6   : > { %v1039_v38 = vpack.c.bf16 %v1035_v24, %v1035_v24  ;;  %v1040_v39 = vpack.c.bf16 %v1036_v25, %v1036_v25  ;;  %v1041_v40 = vpack.c.bf16 %v1037_v26, %v1037_v26  ;;  %v1042_v41 = vpack.c.bf16 %v1038_v30, %v1038_v30 }
 0x1e7   : > { %v1282_v42 = vrot.slane %v1275_v32, %v3474_v31  ;;  %v1290_v43 = vrot.slane %v2483_v33, %v3474_v31  ;;  %v1298_v44 = vrot.slane %v1291_v35, %v3474_v31  ;;  %v1306_v45 = vrot.slane %v2484_v36, %v3474_v31 }
 0x1e8   : > { %1044 = vst.msk [vmem:[#allocation2] sm:$0xf] %vm1043_vm2, %v1039_v38  ;;  %1045 = vst.msk [vmem:[#allocation2 + $0x4] sm:$0xf] %vm1043_vm2, %v1040_v39  ;;  %v1125_v9 = vcvt.s32.f32 %v1124_v8  ;;  %v1358_v13 = vsub.s32 0, %v3467_v27 }
 0x1e9   : > { %1046 = vst.msk [vmem:[#allocation2 + $0x8] sm:$0xf] %vm1043_vm2, %v1041_v40  ;;  %1047 = vst.msk [vmem:[#allocation2 + $0xc] sm:$0xf] %vm1043_vm2, %v1042_v41  ;;  %v1307_v46 = vcombine.low %v1282_v42, %v1290_v43  ;;  %v1323_v47 = vcombine.low %v1298_v44, %v1306_v45  ;;  %v1308_v54 = vcombine.high %v1282_v42, %v1290_v43 }
 0x1ea   : > { %v1324_v55 = vcombine.high %v1298_v44, %v1306_v45  ;;  %v2478_v10 = vadd.f32 -1.0, %v1125_v9 }
 0x1eb   : > { %v1315_v48 = vrot.slane %v1307_v46, %v3487_v37  ;;  %v1331_v49 = vrot.slane %v1323_v47, %v3487_v37  ;;  %v1322_v62 = vrot.slane %v1308_v54, %v3487_v37 }
 0x1ec   : > { %v1338_v63 = vrot.slane %v1324_v55, %v3487_v37  ;;  %v1127_v12 = vmul.f32 1e+09, %v2478_v10 }
 0x1ed   : > { %v1339_v56 = vcombine.low %v1315_v48, %v1331_v49  ;;  %v1340_v57 = vcombine.high %v1315_v48, %v1331_v49 }
 0x1ee   : > { %v1341_v3 = vcombine.low %v1322_v62, %v1338_v63  ;;  %v1342_v4 = vcombine.high %v1322_v62, %v1338_v63  ;;  %v1359_v14 = vrot.slane %v1127_v12, %v1358_v13 }
 0x1ef   : > { %v1347_v50 = vld [vmem:[#allocation2] sm:$0xf]  ;;  %v1348_v51 = vld [vmem:[#allocation2 + $0x4] sm:$0xf]  ;;  %v1343_v60 = vpack.c.bf16 %v1339_v56, %v1339_v56  ;;  %v1344_v61 = vpack.c.bf16 %v1340_v57, %v1340_v57 }
 0x1f0   : > { %v1366_v52 = vsel %vm1361_vm3, %v1347_v50, 0  ;;  %v1412_v53 = vsel %vm1361_vm3, %v1348_v51, 0  ;;  %v1349_v58 = vld [vmem:[#allocation2 + $0x8] sm:$0xf]  ;;  %v1350_v59 = vld [vmem:[#allocation2 + $0xc] sm:$0xf]  ;;  %v1345_v5 = vpack.c.bf16 %v1341_v3, %v1341_v3  ;;  %v1346_v7 = vpack.c.bf16 %v1342_v4, %v1342_v4 }
 0x1f1   : > { %2571 = vmatpush3.bf16.xpose.msra.mxu0 %v1366_v52  ;;  %2577 = vmatpush3.bf16.xpose.msra.mxu1 %v1412_v53  ;;  %v1458_v1 = vsel %vm1361_vm3, %v1349_v58, 0  ;;  %v1504_v2 = vsel %vm1361_vm3, %v1350_v59, 0 }
 0x1f2   : > { %2582 = vmatprep.subr.bf16.mxu0 %v3137_v0  ;;  %2588 = vmatprep.subr.bf16.mxu1 %v3137_v0 }
 0x1f8   : > { %2573 = vmatmul.mubr.msk.bf16.vlgmr.msra.gmra.mxu0 %vm1361_vm3, %v1343_v60  ;;  %2579 = vmatmul.mubr.msk.bf16.vlgmr.msra.gmra.mxu1 %vm1361_vm3, %v1344_v61 }
 0x1f9   : > { %2583 = vmatpush3.bf16.xpose.msra.mxu0 %v1458_v1  ;;  %2589 = vmatpush3.bf16.xpose.msra.mxu1 %v1504_v2 }
 0x1fa   : > { %2584 = vmatprep.mubr.msk.bf16.mxu0 %vm3138_vm0, %v3137_v0  ;;  %2590 = vmatprep.mubr.msk.bf16.mxu1 %vm3138_vm0, %v3137_v0 }
 0x1fb   : > { %2594 = vmatprep.subr.bf16.mxu0 %v3137_v0  ;;  %2600 = vmatprep.subr.bf16.mxu1 %v3137_v0 }
 0x200   : > { %2585 = vmatmul.mubr.msk.bf16.vlgmr.msra.gmra.mxu0 %vm1361_vm3, %v1345_v5  ;;  %2591 = vmatmul.mubr.msk.bf16.vlgmr.msra.gmra.mxu1 %vm1361_vm3, %v1346_v7 }
 0x201   : > { %2596 = vmatprep.mubr.msk.bf16.mxu0 %vm3138_vm0, %v3137_v0  ;;  %2602 = vmatprep.mubr.msk.bf16.mxu1 %vm3138_vm0, %v3137_v0 }
 0x2b8   : > { %v1402_v15 = vpop.f32.mrf.mxu0  ;;  %v1448_v16 = vpop.f32.mrf.mxu1 }
 0x2b9   : > { %v1403_v17 = vadd.f32 %v1402_v15, %v1359_v14  ;;  %v1449_v18 = vadd.f32 %v1448_v16, %v1359_v14 }
 0x2ba   : > { %v2574_v19 = vpop.f32.mrf.mxu0  ;;  %v2580_v20 = vpop.f32.mrf.mxu1 }
 0x2bb   : > { %v1546_v21 = vsel %vm1361_vm3, %v1403_v17, -inf  ;;  %v1549_v22 = vsel %vm1361_vm3, %v1449_v18, -inf }
 0x2bc   : > { %1547 = vmax.xlane.f32.xlu0 %v1546_v21  ;;  %v1405_v23 = vpop.f32.mrf.mxu0  ;;  %1550 = vmax.xlane.f32.xlu1 %v1549_v22  ;;  %v1451_v24 = vpop.f32.mrf.mxu1 }
 0x2be   : > { %v2575_v25 = vpop.f32.mrf.mxu0  ;;  %v2581_v26 = vpop.f32.mrf.mxu1 }
 0x2c0   : > { %v1494_v30 = vpop.f32.mrf.mxu0  ;;  %v1540_v32 = vpop.f32.mrf.mxu1 }
 0x2c1   : > { %v1495_v27 = vadd.f32 %v1494_v30, %v1359_v14  ;;  %v1541_v36 = vadd.f32 %v1540_v32, %v1359_v14 }
 0x2c2   : > { %v2586_v33 = vpop.f32.mrf.mxu0  ;;  %v2592_v35 = vpop.f32.mrf.mxu1 }
 0x2c3   : > { %v1552_v38 = vsel %vm1361_vm3, %v1495_v27, -inf  ;;  %v1555_v43 = vsel %vm1361_vm3, %v1541_v36, -inf }
 0x2c4   : > { %1553 = vmax.xlane.f32.xlu0 %v1552_v38  ;;  %v1497_v39 = vpop.f32.mrf.mxu0  ;;  %v1543_v40 = vpop.f32.mrf.mxu1 }
 0x2c6   : > { %v2587_v41 = vpop.f32.mrf.mxu0  ;;  %v2593_v42 = vpop.f32.mrf.mxu1 }
 0x2c8   : > { %1556 = vmax.xlane.f32.xlu0 %v1555_v43 }
 0x2cd   : > { %891 = vrot.lane.b32.xlu1 %v3462_v11, %s3144_s16 }
 0x2d1   : > { %895 = vrot.lane.b32.xlu1 %v3480_v34, %s3144_s16 }
 0x2d5   : > { %897 = vrot.lane.b32.xlu1 %v3469_v28, %s3144_s16 }
 0x2de   : > { %893 = vrot.lane.b32.xlu0 %v3471_v29, %s3144_s16  ;;  %s2223_s16 = scalar_lea.sflag [#allocation18], %s3408_s7 }
 0x345   : > { %v1548_v44 = vpop.xlane.xlu0 %1547  ;;  %v1551_v45 = vpop.xlane.xlu1 %1550 }
 0x346   : > { %v1558_v46 = vsub.f32 %v1403_v17, %v1548_v44  ;;  %v1559_v47 = vsub.f32 %v1449_v18, %v1551_v45 }
 0x348   : > { %v1562_v48 = vmul.f32 1.442695, %v1558_v46  ;;  %v1564_v49 = vmul.f32 1.442695, %v1559_v47 }
 0x349   : > { %v892_v50 = vpop.permute.xlu1 %891 }
 0x34a   : > { %2800 = vpow2.f32 %v1562_v48 }
 0x34b   : > { %2802 = vpow2.f32 %v1564_v49 }
 0x34d   : > { %v1554_v51 = vpop.xlane.xlu0 %1553  ;;  %v896_v53 = vpop.permute.xlu1 %895 }
 0x34e   : > { %v1560_v52 = vsub.f32 %v1495_v27, %v1554_v51  ;;  %v903_v55 = vcombine.low %v892_v50, %v896_v53  ;;  %v904_v28 = vcombine.high %v892_v50, %v896_v53 }
 0x350   : > { %v1566_v54 = vmul.f32 1.442695, %v1560_v52  ;;  %v911_v61 = vrot.slane %v903_v55, %v3474_v31  ;;  %v918_v63 = vrot.slane %v904_v28, %v3474_v31 }
 0x351   : > { %v1557_v11 = vpop.xlane.xlu0 %1556  ;;  %v898_v29 = vpop.permute.xlu1 %897 }
 0x352   : > { %2804 = vpow2.f32 %v1566_v54  ;;  %v1561_v34 = vsub.f32 %v1541_v36, %v1557_v11 }
 0x354   : > { %v1568_v56 = vmul.f32 1.442695, %v1561_v34 }
 0x355   : > { %v894_v57 = vpop.permute.xlu0 %893 }
 0x356   : > { %2806 = vpow2.f32 %v1568_v56  ;;  %v919_v58 = vcombine.low %v894_v57, %v898_v29  ;;  %v920_v59 = vcombine.high %v894_v57, %v898_v29 }
 0x357   : > { %v3556_v60 = vpop.eup %2800 }
 0x358   : > { %v3559_v62 = vpop.eup %2802  ;;  %v927_v1 = vrot.slane %v919_v58, %v3474_v31  ;;  %v934_v2 = vrot.slane %v920_v59, %v3474_v31  ;;  %v1570_v3 = vsel %vm1361_vm3, %v3556_v60, 0.0 }
 0x359   : > { %v1573_v4 = vsel %vm1361_vm3, %v3559_v62, 0.0  ;;  %1571 = vadd.xlane.f32.xlu0 %v1570_v3 }
 0x35a   : > { %v935_v5 = vcombine.low %v911_v61, %v927_v1  ;;  %v936_v7 = vcombine.high %v911_v61, %v927_v1  ;;  %v951_v8 = vcombine.low %v918_v63, %v934_v2  ;;  %v952_v9 = vcombine.high %v918_v63, %v934_v2  ;;  %1574 = vadd.xlane.f32.xlu1 %v1573_v4 }
 0x35c   : > { %v943_v10 = vrot.slane %v935_v5, %v3487_v37  ;;  %v950_v12 = vrot.slane %v936_v7, %v3487_v37  ;;  %v959_v13 = vrot.slane %v951_v8, %v3487_v37  ;;  %v966_v14 = vrot.slane %v952_v9, %v3487_v37 }
 0x35e   : > { %v1048_v15 = vcombine.low %v943_v10, %v950_v12  ;;  %v2476_v16 = vcombine.high %v943_v10, %v950_v12  ;;  %v1064_v17 = vcombine.low %v959_v13, %v966_v14  ;;  %v2477_v18 = vcombine.high %v959_v13, %v966_v14 }
 0x35f   : > { %v3572_v19 = vpop.eup %2804 }
 0x360   : > { %v1055_v20 = vrot.slane %v1048_v15, %v3474_v31  ;;  %v1063_v21 = vrot.slane %v2476_v16, %v3474_v31  ;;  %v1071_v22 = vrot.slane %v1064_v17, %v3474_v31  ;;  %v1079_v23 = vrot.slane %v2477_v18, %v3474_v31 }
 0x361   : > { %v1576_v24 = vsel %vm1361_vm3, %v3572_v19, 0.0 }
 0x362   : > { %v1080_v25 = vcombine.low %v1055_v20, %v1063_v21  ;;  %v1081_v26 = vcombine.high %v1055_v20, %v1063_v21  ;;  %v1096_v30 = vcombine.low %v1071_v22, %v1079_v23  ;;  %v1097_v32 = vcombine.high %v1071_v22, %v1079_v23  ;;  %1577 = vadd.xlane.f32.xlu0 %v1576_v24 }
 0x363   : > { %v3580_v27 = vpop.eup %2806 }
 0x364   : > { %v1088_v33 = vrot.slane %v1080_v25, %v3487_v37  ;;  %v1095_v35 = vrot.slane %v1081_v26, %v3487_v37  ;;  %v1104_v36 = vrot.slane %v1096_v30, %v3487_v37  ;;  %v1111_v38 = vrot.slane %v1097_v32, %v3487_v37 }
 0x365   : > { %v1579_v39 = vsel %vm1361_vm3, %v3580_v27, 0.0 }
 0x366   : > { %v1112_v40 = vcombine.low %v1088_v33, %v1104_v36  ;;  %v1113_v41 = vcombine.high %v1088_v33, %v1104_v36  ;;  %v1114_v42 = vcombine.low %v1095_v35, %v1111_v38  ;;  %v1115_v43 = vcombine.high %v1095_v35, %v1111_v38  ;;  %1580 = vadd.xlane.f32.xlu0 %v1579_v39  ;;  %v2792_v39 = vld [vmem:[#allocation12 + $0x8] sm:$0xff]  }
 0x368   : > { %v1116_v44 = vpack.c.bf16 %v1112_v40, %v1112_v40  ;;  %v1117_v45 = vpack.c.bf16 %v1113_v41, %v1113_v41  ;;  %v1118_v46 = vpack.c.bf16 %v1114_v42, %v1114_v42  ;;  %v1119_v47 = vpack.c.bf16 %v1115_v43, %v1115_v43 }
 0x36a   : > { %1120 = vst.msk [vmem:[#allocation3] sm:$0xf] %vm1043_vm2, %v1116_v44  ;;  %1121 = vst.msk [vmem:[#allocation3 + $0x4] sm:$0xf] %vm1043_vm2, %v1117_v45 }
 0x36b   : > { %1122 = vst.msk [vmem:[#allocation3 + $0x8] sm:$0xf] %vm1043_vm2, %v1118_v46  ;;  %1123 = vst.msk [vmem:[#allocation3 + $0xc] sm:$0xf] %vm1043_vm2, %v1119_v47 }
 0x371   : > { %v1351_v48 = vld [vmem:[#allocation3] sm:$0xf]  ;;  %v1352_v49 = vld [vmem:[#allocation3 + $0x4] sm:$0xf] }
 0x372   : > { %v1603_v50 = vsel %vm1601_vm4, %v1351_v48, 0  ;;  %v1649_v51 = vsel %vm1601_vm4, %v1352_v49, 0  ;;  %v1353_v29 = vld [vmem:[#allocation3 + $0x8] sm:$0xf]  ;;  %v1354_v58 = vld [vmem:[#allocation3 + $0xc] sm:$0xf] }
 0x373   : > { %2595 = vmatpush3.bf16.msra.mxu0 %v1603_v50  ;;  %2601 = vmatpush3.bf16.msra.mxu1 %v1649_v51  ;;  %v1695_v61 = vsel %vm1601_vm4, %v1353_v29, 0  ;;  %v2793_v49 = vld [vmem:[#allocation12] sm:$0xff]  }
 0x374   : > { %2606 = vmatprep.subr.bf16.mxu0 %v3137_v0  ;;  %2612 = vmatprep.subr.bf16.mxu1 %v3137_v0 }
 0x3e2   : > { %v1572_v52 = vpop.xlane.xlu0 %1571 }
 0x3e3   : > { %v1575_v53 = vpop.xlane.xlu1 %1574  ;;  %2808 = vrcp.f32 %v1572_v52 }
 0x3e4   : > { %2810 = vrcp.f32 %v1575_v53 }
 0x3eb   : > { %v1578_v54 = vpop.xlane.xlu0 %1577 }
 0x3ec   : > { %2812 = vrcp.f32 %v1578_v54 }
 0x3ef   : > { %v1581_v11 = vpop.xlane.xlu0 %1580 }
 0x3f0   : > { %v2809_v34 = vpop.eup %2808  ;;  %2814 = vrcp.f32 %v1581_v11 }
 0x3f1   : > { %v2811_v55 = vpop.eup %2810  ;;  %v1586_v28 = vmul.f32 %v2809_v34, %v3556_v60  ;;  %v1741_v60 = vsel %vm1601_vm4, %v1354_v58, 0 }
 0x3f2   : > { %v1587_v56 = vmul.f32 %v2811_v55, %v3559_v62 }
 0x3f3   : > { %1590 = vst.msk [vmem:[%s3599_s0] sm:$0xff] %vm1361_vm3, %v1586_v28  ;;  %v1594_v57 = vpack.c.bf16 %v1586_v28, %v1586_v28 }
 0x3f4   : > { %1591 = vst.msk [vmem:[%s3599_s0 + $0x8] sm:$0xff] %vm1361_vm3, %v1587_v56  ;;  %v1595_v59 = vpack.c.bf16 %v1587_v56, %v1587_v56 }
 0x3f5   : > { %2597 = vmatmul.mubr.msk.bf16.vlgmr.msra.gmra.mxu0 %vm1361_vm3, %v1594_v57 }
 0x3f6   : > { %2603 = vmatmul.mubr.msk.bf16.vlgmr.msra.gmra.mxu1 %vm1361_vm3, %v1595_v59  ;;  %2607 = vmatpush3.bf16.msra.mxu0 %v1695_v61 }
 0x3f7   : > { %2613 = vmatpush3.bf16.msra.mxu1 %v1741_v60  ;;  %2608 = vmatprep.mubr.msk.bf16.mxu0 %vm3138_vm0, %v3137_v0 }
 0x3f8   : > { %2614 = vmatprep.mubr.msk.bf16.mxu1 %vm3138_vm0, %v3137_v0  ;;  %2618 = vmatprep.subr.bf16.mxu0 %v3137_v0 }
 0x3f9   : > { %v2813_v62 = vpop.eup %2812  ;;  %2626 = vmatprep.subr.bf16.mxu1 %v3137_v0 }
 0x3fa   : > { %v1588_v63 = vmul.f32 %v2813_v62, %v3572_v19 }
 0x3fc   : > { %1592 = vst.msk [vmem:[%s3599_s0 + $0x10] sm:$0xff] %vm1361_vm3, %v1588_v63  ;;  %v1596_v1 = vpack.c.bf16 %v1588_v63, %v1588_v63 }
 0x3fd   : > { %v2815_v2 = vpop.eup %2814 }
 0x3fe   : > { %2609 = vmatmul.mubr.msk.bf16.vlgmr.msra.gmra.mxu0 %vm1361_vm3, %v1596_v1  ;;  %v1589_v3 = vmul.f32 %v2815_v2, %v3580_v27 }
 0x3ff   : > { %2622 = vmatprep.mubr.msk.bf16.mxu0 %vm3138_vm0, %v3137_v0  ;;  %2619 = vmatpush3.bf16.msra.mxu0 %v2792_v39  ;;  %v2501_v39 = vld [vmem:[%s3780_s12] ss:$0 sm:$0xff] }
 0x400   : > { %1593 = vst.msk [vmem:[%s3599_s0 + $0x18] sm:$0xff] %vm1361_vm3, %v1589_v3  ;;  %v1597_v4 = vpack.c.bf16 %v1589_v3, %v1589_v3  ;;  %2620 = vmatprep.subr.bf16.mxu0 %v3137_v0 }
 0x402   : > { %2615 = vmatmul.mubr.msk.bf16.vlgmr.msra.gmra.mxu1 %vm1361_vm3, %v1597_v4  ;;  %v2495_v4 = vld [vmem:[#allocation13] ss:$0 sm:$0xff] }
 0x403   : > { %2630 = vmatprep.mubr.msk.bf16.mxu1 %vm3138_vm0, %v3137_v0  ;;  %2621 = vmatpush3.bf16.msra.mxu0 %v2793_v49 }
 0x404   : > { %2634 = vmatprep.subr.bf16.mxu0 %v3137_v0 }
 0x4b5   : > { %v1639_v5 = vpop.f32.mrf.mxu0 }
 0x4b6   : > { %v1685_v7 = vpop.f32.mrf.mxu1 }
 0x4b7   : > { %v2598_v8 = vpop.f32.mrf.mxu0 }
 0x4b8   : > { %v2604_v9 = vpop.f32.mrf.mxu1 }
 0x4b9   : > { %v1642_v10 = vpop.f32.mrf.mxu0 }
 0x4ba   : > { %v1688_v12 = vpop.f32.mrf.mxu1 }
 0x4bb   : > { %v2599_v13 = vpop.f32.mrf.mxu0 }
 0x4bc   : > { %v2605_v14 = vpop.f32.mrf.mxu1 }
 0x4be   : > { %v1731_v15 = vpop.f32.mrf.mxu0 }
 0x4bf   : > { %v1783_v17 = vcombine.low %v1639_v5, %v1731_v15  ;;  %v1784_v18 = vcombine.high %v1639_v5, %v1731_v15 }
 0x4c0   : > { %v2610_v16 = vpop.f32.mrf.mxu0 }
 0x4c1   : > { %v1791_v25 = vrot.slane %v1783_v17, %v3474_v31  ;;  %v1798_v26 = vrot.slane %v1784_v18, %v3474_v31 }
 0x4c2   : > { %v1734_v19 = vpop.f32.mrf.mxu0  ;;  %v1777_v20 = vpop.f32.mrf.mxu1 }
 0x4c3   : > { %v1799_v21 = vcombine.low %v1685_v7, %v1777_v20  ;;  %v1800_v22 = vcombine.high %v1685_v7, %v1777_v20  ;;  %v2794_v19 = vld [vmem:[%s3779_s11 + $0x8] sm:$0xff]   ;;  %v2796_v20 = vld [vmem:[%s3781_s13 + $0x18] sm:$0xff]  }
 0x4c4   : > { %v2611_v23 = vpop.f32.mrf.mxu0  ;;  %v2616_v24 = vpop.f32.mrf.mxu1  ;;  %2627 = vmatpush3.bf16.msra.mxu1 %v2794_v19 }
 0x4c5   : > { %v1807_v30 = vrot.slane %v1799_v21, %v3474_v31  ;;  %v1814_v32 = vrot.slane %v1800_v22, %v3474_v31  ;;  %2628 = vmatprep.subr.bf16.mxu1 %v3137_v0  ;;  %v2797_v21 = vld [vmem:[%s3781_s13 + $0x10] sm:$0xff]  }
 0x4c6   : > { %v1780_v27 = vpop.f32.mrf.mxu1 }
 0x4c7   : > { %v1815_v33 = vcombine.low %v1791_v25, %v1807_v30  ;;  %v1816_v35 = vcombine.high %v1791_v25, %v1807_v30  ;;  %v1831_v36 = vcombine.low %v1798_v26, %v1814_v32  ;;  %v1832_v38 = vcombine.high %v1798_v26, %v1814_v32  ;;  %v2499_v26 = vld [vmem:[#allocation15] ss:$0 sm:$0xff]  ;;  %v2500_v32 = vld [vmem:[%s3778_s10] ss:$0 sm:$0xff] }
 0x4c8   : > { %v2617_v40 = vpop.f32.mrf.mxu1 }
 0x4c9   : > { %v1823_v41 = vrot.slane %v1815_v33, %v3487_v37  ;;  %v1830_v42 = vrot.slane %v1816_v35, %v3487_v37  ;;  %v1839_v43 = vrot.slane %v1831_v36, %v3487_v37  ;;  %v1846_v44 = vrot.slane %v1832_v38, %v3487_v37  ;;  %v2798_v36 = vld [vmem:[%s3781_s13 + $0x8] sm:$0xff]   ;;  %v2799_v38 = vld [vmem:[%s3781_s13] sm:$0xff]  }
 0x4cb   : > { %v1851_v45 = vcombine.low %v1823_v41, %v1830_v42  ;;  %v2493_v46 = vcombine.high %v1823_v41, %v1830_v42  ;;  %v1867_v47 = vcombine.low %v1839_v43, %v1846_v44  ;;  %v2494_v48 = vcombine.high %v1839_v43, %v1846_v44 }
 0x4cd   : > { %v1858_v50 = vrot.slane %v1851_v45, %v3474_v31  ;;  %v1866_v51 = vrot.slane %v2493_v46, %v3474_v31  ;;  %v1874_v52 = vrot.slane %v1867_v47, %v3474_v31  ;;  %v1882_v53 = vrot.slane %v2494_v48, %v3474_v31 }
 0x4cf   : > { %v1884_v54 = vcombine.high %v1858_v50, %v1866_v51  ;;  %v1900_v11 = vcombine.high %v1874_v52, %v1882_v53  ;;  %v1883_v34 = vcombine.low %v1858_v50, %v1866_v51  ;;  %v1899_v55 = vcombine.low %v1874_v52, %v1882_v53 }
 0x4d1   : > { %v1898_v28 = vrot.slane %v1884_v54, %v3487_v37  ;;  %v1914_v56 = vrot.slane %v1900_v11, %v3487_v37  ;;  %v1891_v29 = vrot.slane %v1883_v34, %v3487_v37  ;;  %v1907_v57 = vrot.slane %v1899_v55, %v3487_v37 }
 0x4d3   : > { %v1917_v58 = vcombine.low %v1898_v28, %v1914_v56  ;;  %v1916_v59 = vcombine.high %v1891_v29, %v1907_v57  ;;  %v1915_v61 = vcombine.low %v1891_v29, %v1907_v57  ;;  %v1918_v31 = vcombine.high %v1898_v28, %v1914_v56 }
 0x4d5   : > { %1924 = vrot.lane.b32.xlu0 %v1917_v58, %s3145_s20  ;;  %1920 = vrot.lane.b32.xlu1 %v1916_v59, %s3146_s21  ;;  %s3148_s20 = smov [#allocation17]  }
 0x4d9   : > { %1928 = vrot.lane.b32.xlu1 %v1918_v31, %s3147_s24  ;;  %s3008_s24 = sshll.u32 %s3148_s20, 4  ;;  %s3009_s24 = int_to_ptr.vmem [resolvable:$false] %s3008_s24 }
 0x4da   : > { %s3010_s0 = scalar_lea.vmem %s3009_s24, 1024  ;;  %p3011_p4 = scmp.lt.s32.totalorder %s3694_s25, %s3009_s24 }
 0x4db   : > { %p3012_p0 = scmp.lt.s32.totalorder %s3010_s0, %s3004_s9 }
 0x4dd   : > { %p3013_p6 = por %p3012_p0, %p3011_p4 }
 0x4df   : > { %p3014_p2 = pnand %p3013_p6, %p3007_p1 }
 0x547   : > { %v1921_v60 = vpop.permute.xlu1 %1920  ;;  %v1925_v62 = vpop.permute.xlu0 %1924 }
 0x548   : > { %v1931_v63 = vsel %vm1361_vm3, %v1915_v61, %v1921_v60 }
 0x549   : > { %v1933_v2 = vsel %vm1932_vm5, %v1931_v63, %v1925_v62 }
 0x54b   : > { %v1929_v1 = vpop.permute.xlu1 %1928 }
 0x54c   : > { %v1935_v37 = vsel %vm1934_vm6, %v1933_v2, %v1929_v1 }
 0x54d   : > { %v1936_v3 = vpack.c.bf16 %v1935_v37, %v1935_v37 }
 0x54f   : > { %2623 = vmatmul.mubr.msk.bf16.vlgmr.msra.gmra.mxu0 %vm769_vm1, %v1936_v3 }
 0x550   : > { %2642 = vmatprep.mubr.msk.bf16.mxu0 %vm3138_vm0, %v3137_v0  ;;  %2635 = vmatpush3.bf16.msra.mxu0 %v2796_v20 }
 0x551   : > { %2636 = vmatprep.subr.bf16.mxu0 %v3137_v0 }
 0x554   : > { %2637 = vmatpush3.bf16.msra.mxu0 %v2797_v21 }
 0x555   : > { %2638 = vmatprep.subr.bf16.mxu0 %v3137_v0 }
 0x558   : > { %2639 = vmatpush3.bf16.msra.mxu0 %v2798_v36 }
 0x559   : > { %2640 = vmatprep.subr.bf16.mxu0 %v3137_v0  ;;  %v2505_v0 = vld [vmem:[%s3782_s14] ss:$0 sm:$0xff] }
 0x55c   : > { %2641 = vmatpush3.bf16.msra.mxu0 %v2799_v38 }
 0x60f   : > { %v1997_v5 = vpop.f32.mrf.mxu0 }
 0x610   : > { %v1998_v7 = vadd.f32 %v2495_v4, %v1997_v5 }
 0x611   : > { %v2624_v8 = vpop.f32.mrf.mxu0 }
 0x612   : > { %v2003_v9 = vadd.f32 %v1998_v7, %v3448_v6  ;;  %v2795_v6 = vld [vmem:[%s3779_s11] sm:$0xff]  }
 0x613   : > { %v2000_v10 = vpop.f32.mrf.mxu0  ;;  %2629 = vmatpush3.bf16.msra.mxu1 %v2795_v6 }
 0x614   : > { %v2006_v12 = vsel %vm769_vm1, %v2003_v9, 0.0 }
 0x615   : > { %2007 = vadd.xlane.f32.xlu1 %v2006_v12  ;;  %v2625_v13 = vpop.f32.mrf.mxu0 }
 0x69e   : > { %v2008_v14 = vpop.xlane.xlu1 %2007 }
 0x69f   : > { %v2010_v15 = vmul.f32 0.03125, %v2008_v14 }
 0x6a1   : > { %v2011_v16 = vsub.f32 %v2003_v9, %v2010_v15 }
 0x6a3   : > { %v2012_v17 = vmul.f32 %v2011_v16, %v2011_v16 }
 0x6a5   : > { %v2013_v18 = vsel %vm769_vm1, %v2012_v17, 0.0 }
 0x6a6   : > { %2014 = vadd.xlane.f32.xlu0 %v2013_v18 }
 0x72f   : > { %v2015_v22 = vpop.xlane.xlu0 %2014 }
 0x730   : > { %v2016_v23 = vmul.f32 0.03125, %v2015_v22 }
 0x732   : > { %v2017_v24 = vadd.f32 1e-05, %v2016_v23 }
 0x734   : > { %2816 = vrsqrt.f32 %v2017_v24 }
 0x741   : > { %v2817_v25 = vpop.eup %2816 }
 0x742   : > { %v2019_v30 = vmul.f32 %v2817_v25, %v2011_v16 }
 0x744   : > { %v2026_v27 = vmul.f32 %v2499_v26, %v2019_v30 }
 0x746   : > { %v2033_v33 = vadd.f32 %v2500_v32, %v2026_v27 }
 0x748   : > { %v2034_v35 = vpack.c.bf16 %v2033_v33, %v2033_v33 }
 0x74a   : > { %2631 = vmatmul.mubr.msk.bf16.vlgmr.msra.gmra.mxu1 %vm769_vm1, %v2034_v35 }
 0x80a   : > { %v2095_v40 = vpop.f32.mrf.mxu1 }
 0x80b   : > { %v2096_v41 = vadd.f32 %v2501_v39, %v2095_v40 }
 0x80c   : > { %v2632_v42 = vpop.f32.mrf.mxu1 }
 0x80d   : > { %v2101_v43 = vmax.f32 %v2096_v41, 0.0 }
 0x80e   : > { %v2098_v44 = vpop.f32.mrf.mxu1 }
 0x80f   : > { %v2102_v45 = vpack.c.bf16 %v2101_v43, %v2101_v43 }
 0x810   : > { %v2633_v46 = vpop.f32.mrf.mxu1 }
 0x811   : > { %2643 = vmatmul.mubr.msk.bf16.vlgmr.msra.gmra.mxu0 %vm2142_vm7, %v2102_v45 }
 0x8d1   : > { %v2180_v47 = vpop.f32.mrf.mxu0 }
 0x8d2   : > { %v2181_v48 = vadd.f32 %v2505_v0, %v2180_v47 }
 0x8d3   : > { %v2644_v49 = vpop.f32.mrf.mxu0 }
 0x8d4   : > { %v2186_v50 = vadd.f32 %v2181_v48, %v2033_v33 }
 0x8d5   : > { %v2183_v51 = vpop.f32.mrf.mxu0 }
 0x8d6   : > { %v2189_v52 = vsel %vm769_vm1, %v2186_v50, 0.0 }
 0x8d7   : > { %2190 = vadd.xlane.f32.xlu0 %v2189_v52  ;;  %v2645_v53 = vpop.f32.mrf.mxu0 }
 0x960   : > { %v2191_v54 = vpop.xlane.xlu0 %2190 }
 0x961   : > { %v2192_v11 = vmul.f32 0.03125, %v2191_v54 }
 0x963   : > { %v2193_v34 = vsub.f32 %v2186_v50, %v2192_v11 }
 0x965   : > { %v2194_v55 = vmul.f32 %v2193_v34, %v2193_v34 }
 0x967   : > { %v2195_v28 = vsel %vm769_vm1, %v2194_v55, 0.0 }
 0x968   : > { %2196 = vadd.xlane.f32.xlu1 %v2195_v28 }
 0x969   : > { %3017 = shalt.err (!%p3014_p2)
}
 0x96a   : > { %s3018_s1 = scalar_lea.hbm %s3692_s8, 512  ;;  %s3022_s2 = scalar_lea.hbm %s3832_s5, 1024 }
 0x96b   : > { %p3019_p5 = scmp.ne.s32.totalorder %s3692_s8, %s3018_s1  ;;  %p3023_p12 = scmp.lt.s32.totalorder %s3692_s8, %s3832_s5 }
 0x96c   : > { %p3024_p8 = scmp.lt.s32.totalorder %s3022_s2, %s3018_s1 }
 0x96d   : > { %p3020_p10 = pnand %p3019_p5, %p3378_p9 }
 0x96e   : > { %p3025_p3 = por %p3024_p8, %p3023_p12 }
 0x96f   : > { %p3021_p13 = pneg %p3020_p10 }
 0x971   : > { %p3026_p7 = pnand %p3025_p3, %p3021_p13 }
 0x973   : > { %3029 = shalt.err (!%p3026_p7)
}
 0x974   : > { %s3149_s23 = smov 128   ;;  %s2466_s9 = sshll.u32 %s3408_s7, 3 }
 0x975   : > { %2673 = dma.vmem_to_hbm [thread:$0]  (%p3378_p9), %s3694_s25, 512, %s3692_s8, %s2223_s16, %s3149_s23, %s3149_s23, %s3146_s21  }
 0x976   : > { %s3833_s0 = sld [smem:[#allocation36_spill]]  ;;  %s2515_s2 = sshll.u32 %s3118_s30, 7 }
 0x977   : > { %s3834_s4 = sld [smem:[#allocation37_spill]]  ;;  %s720_s22 = scalar_lea.vmem [#allocation16], %s2466_s9 }
 0x978   : > { %s2237_s21 = sshll.u32 %s720_s22, 4  ;;  %s3835_s16 = sld [smem:[#allocation38_spill]]  ;;  %s2238_s21 = int_to_ptr.vmem [resolvable:$true] %s2237_s21 }
 0x979   : > { %s2218_s23 = scalar_lea.sflag [#allocation6], %s3408_s7  ;;  %s3030_s20 = scalar_lea.vmem %s2238_s21, 128 }
 0x97a   : > { %p3031_p1 = scmp.ne.s32.totalorder %s2238_s21, %s3030_s20  ;;  %s3150_s24 = smov [#allocation16]  }
 0x97c   : > { %v2511_v59 = vld [vmem:[%s3833_s0] ss:$0 sm:$0xff]  ;;  %p3032_p4 = pnand %p3031_p1, %p3378_p9  ;;  %s3034_s0 = sshll.u32 %s3150_s24, 4  ;;  %s3035_s0 = int_to_ptr.vmem [resolvable:$false] %s3034_s0 }
 0x97d   : > { %v2512_v31 = vld [vmem:[%s3834_s4] ss:$0 sm:$0xff]  ;;  %s3036_s30 = scalar_lea.vmem %s3035_s0, 256  ;;  %p3037_p6 = scmp.lt.s32.totalorder %s2238_s21, %s3035_s0 }
 0x97e   : > { %s2235_s6 = scalar_lea.hbm %s3835_s16, %s2515_s2  ;;  %p3033_p0 = pneg %p3032_p4 }
 0x97f   : > { %p3038_p2 = scmp.lt.s32.totalorder %s3036_s30, %s3030_s20 }
 0x981   : > { %p3039_p5 = por %p3038_p2, %p3037_p6 }
 0x983   : > { %p3040_p10 = pnand %p3039_p5, %p3033_p0 }
 0x9f1   : > { %v2197_v56 = vpop.xlane.xlu1 %2196 }
 0x9f2   : > { %v2198_v29 = vmul.f32 0.03125, %v2197_v56 }
 0x9f4   : > { %v2199_v57 = vadd.f32 1e-05, %v2198_v29 }
 0x9f6   : > { %2818 = vrsqrt.f32 %v2199_v57 }
 0xa03   : > { %v2819_v58 = vpop.eup %2818 }
 0xa04   : > { %v2201_v61 = vmul.f32 %v2819_v58, %v2193_v34 }
 0xa06   : > { %v2208_v60 = vmul.f32 %v2511_v59, %v2201_v61 }
 0xa08   : > { %v2215_v62 = vadd.f32 %v2512_v31, %v2208_v60 }
 0xa0a   : > { %2216 = vst.msk [vmem:[%s720_s22] sm:$0xff] %vm769_vm1, %v2215_v62 }
 0xa0b   : > { %3043 = shalt.err (!%p3040_p10)
}
 0xa0c   : > { %s3044_s9 = scalar_lea.hbm %s2235_s6, 128  ;;  %s3048_s18 = scalar_lea.hbm %s3835_s16, 256 }
 0xa0d   : > { %p3045_p13 = scmp.ne.s32.totalorder %s2235_s6, %s3044_s9  ;;  %p3049_p3 = scmp.lt.s32.totalorder %s2235_s6, %s3835_s16 }
 0xa0e   : > { %p3050_p7 = scmp.lt.s32.totalorder %s3048_s18, %s3044_s9 }
 0xa0f   : > { %p3046_p12 = pnand %p3045_p13, %p3378_p9 }
 0xa10   : > { %p3051_p1 = por %p3050_p7, %p3049_p3 }
 0xa11   : > { %p3047_p8 = pneg %p3046_p12 }
 0xa13   : > { %p3052_p4 = pnand %p3051_p1, %p3047_p8 }
 0xa15   : > { %3055 = shalt.err (!%p3052_p4)
}
 0xa16   : > { %2672 = dma.vmem_to_hbm [thread:$0]  (%p3378_p9), %s2238_s21, 128, %s2235_s6, %s2218_s23  }
 0xa17 PF: > { %s2266_s22 = sand.u32 1, %s3106_s27   ;;  %p3836_p0 = scmp.ge.s32.totalorder %s3126_s19, 2 }
 0xa18   : > { %s2267_s25 = scalar_lea.sflag [#allocation6], %s2266_s22 }
 0xa19   : > { %p2700_p6 = pnand %p3836_p0, %p3385_p11 }
 0xa1b   : > { %p2701_p2 = pneg %p2700_p6 }
 0xa1d   : > { %3097 = dma.done.wait (%p2701_p2), %s2267_s25, 128  }
 0xa1e   : > { %3099 = vsyncadd (%p2701_p2), %s2267_s25, 4294967168  ;;  %s2276_s8 = scalar_lea.sflag [#allocation18], %s2266_s22 }
 0xa1f   : > { %3101 = dma.done.wait (%p2701_p2), %s2276_s8, 512  }
 0xa20   : > { %3103 = vsyncadd (%p2701_p2), %s2276_s8, 4294966784  ;;  %s41_s19 = sadd.s32 1, %s3126_s19   ;;  %s3837_s30 = sld [smem:[#allocation25_spill]] }
 0xa21   : > { %p38_p5 = scmp.ge.s32.totalorder %s41_s19, 4   ;;  %s3838_s0 = sld [smem:[#allocation26_spill]] }
 0xa22   : > { %s3839_s27 = smov %s3110_s28  ;;  %s3840_s28 = smov %s3114_s29 }
 0xa23   : > { %s3841_s29 = smov %s3383_s26  ;;  %40 = sbr.rel (!%p38_p5) target bundleno = 25 (0x19), region = 184 }
 0xa28   :  { %2281 = vsyncpa [#allocation5], 1 }
 0xa29   :  { %2283 = vsyncpa [#allocation5 + $0x1], 1 }
 0xa2a   :  { %2284 = vsyncpa [#allocation8], 1 }
 0xa2b   :  { %2285 = vsyncpa [#allocation11], 1 }
 0xa2c   :  { %2286 = vsyncpa [#allocation14], 1 }
 0xa2d   :  { %2287 = vsyncpa [#allocation6], 1 }
 0xa2e   :  { %2289 = vsyncpa [#allocation6 + $0x1], 1 }
 0xa2f   :  { %2290 = vsyncpa [#allocation18], 1 }
 0xa30   :  { %2292 = vsyncpa [#allocation18 + $0x1], 1 }

</bundles_post_ra>
